<compile_context>
chip_gen: v7x
topology: tpu7x:2x2x1
jax: 0.10.0
libtpu: 0.0.40
codegen_flags: <defaults>
</compile_context>

<pallas_src>
import jax
import jax.numpy as jnp
from jax import lax
from jax.experimental import pallas as pl
from jax.experimental.pallas import tpu as pltpu


# ----------------------------- Fused LSTM + classifier kernel -----------------------------
def fused_kernel(x_ref, wx_ref, wh_ref, b_ref, w1_ref, b1_ref, w2_ref, b2_ref,
                 out_ref, proj_ref):
    SB, _ = x_ref.shape                 # (S*Bp, I), time-major, batch padded to sublane
    Hp = wh_ref.shape[0]                # padded hidden (128): each gate = one 128-lane vreg
    Bp = out_ref.shape[0]               # padded batch (multiple of 8 sublanes)
    S = SB // Bp

    # Hoisted input projection (+ bias) for ALL timesteps: one matmul off the recurrent
    # critical path, parked in VMEM scratch so it is not held live in vregs across the loop.
    proj_ref[...] = (
        jnp.dot(x_ref[...], wx_ref[...], preferred_element_type=jnp.float32) + b_ref[...]
    )

    def step(t, carry):
        h, c = carry
        row = pl.multiple_of(t * Bp, 8)                     # aligned sublane offset
        # Only serial work per step: bf16 h @ bf16 Wh on the MXU, f32 accumulate.
        gates = proj_ref[pl.ds(row, Bp), :] + jnp.dot(
            h.astype(jnp.bfloat16), wh_ref[...], preferred_element_type=jnp.float32)

        i_g = jax.nn.sigmoid(gates[:, 0 * Hp:1 * Hp])       # lane-aligned 128-wide slices
        f_g = jax.nn.sigmoid(gates[:, 1 * Hp:2 * Hp])
        g_g = jnp.tanh(gates[:, 2 * Hp:3 * Hp])
        o_g = jax.nn.sigmoid(gates[:, 3 * Hp:4 * Hp])

        c = f_g * c + i_g * g_g
        h = o_g * jnp.tanh(c)
        return (h, c)

    h0 = jnp.zeros((Bp, Hp), jnp.float32)
    c0 = jnp.zeros((Bp, Hp), jnp.float32)
    h, _ = lax.fori_loop(0, S, step, (h0, c0), unroll=True)

    # Classifier: Linear(H,32) -> ReLU -> (Dropout = identity) -> Linear(32,R) -> Softmax(dim=1)
    z = jnp.maximum(
        jnp.dot(h, w1_ref[...], preferred_element_type=jnp.float32) + b1_ref[...], 0.0)
    logits = jnp.dot(z, w2_ref[...], preferred_element_type=jnp.float32) + b2_ref[...]

    m = jnp.max(logits, axis=1, keepdims=True)
    e = jnp.exp(logits - m)
    s = jnp.sum(e, axis=1, keepdims=True)
    r = pl.reciprocal(s, approx=True)       # EUP slot
    r = r * (2.0 - s * r)                   # one Newton step -> f32-level accuracy
    out_ref[...] = e * r                    # single store at the very end


# ----------------------------- One-time weight preparation -----------------------------
def prepare_params(params, Hp=128):
    """Transpose / gate-pad / cast weights ONCE (outside the serving path)."""
    I = params["w_ih"].shape[1]
    H = params["w_hh"].shape[1]
    Hm = params["w1"].shape[1]
    R = params["w2"].shape[1]

    # nn.LSTM stores weight_ih (4H, I), weight_hh (4H, H), gate order i, f, g, o.
    wih_t = jnp.transpose(params["w_ih"], (1, 0)).reshape(I, 4, H)
    wx = jnp.zeros((I, 4, Hp), jnp.float32).at[:, :, :H].set(wih_t).reshape(I, 4 * Hp)

    whh_t = jnp.transpose(params["w_hh"], (1, 0)).reshape(H, 4, H)
    wh = jnp.zeros((Hp, 4, Hp), jnp.float32).at[:H, :, :H].set(whh_t).reshape(Hp, 4 * Hp)
    wh = wh.astype(jnp.bfloat16)            # recurrent operand in MXU-native bf16

    bias = (params["b_ih"] + params["b_hh"]).reshape(4, H)
    b = jnp.zeros((4, Hp), jnp.float32).at[:, :H].set(bias).reshape(1, 4 * Hp)

    w1 = jnp.zeros((Hp, Hm), jnp.float32).at[:H, :].set(params["w1"])  # zero rows for pad
    b1 = params["b1"].reshape(1, Hm)
    w2 = params["w2"]
    b2 = params["b2"].reshape(1, R)
    return dict(wx=wx, wh=wh, b=b, w1=w1, b1=b1, w2=w2, b2=b2)


# ----------------------------- Wrapper -----------------------------
def market_regime_detector(x, prepped):
    """x: (B, S, I) float32, batch-first (PyTorch layout). Returns (B, R) softmax probs."""
    B, S, I = x.shape
    Hp = prepped["wh"].shape[0]
    Hm = prepped["w1"].shape[1]
    R = prepped["w2"].shape[1]
    Bp = ((B + 7) // 8) * 8                                 # pad batch to full sublanes

    # Time-major + batch-padded + flattened: per-step slices become aligned VMEM loads.
    x_tm = jnp.transpose(x, (1, 0, 2))                      # (S, B, I)
    x_tm = jnp.pad(x_tm, ((0, 0), (0, Bp - B), (0, 0)))     # (S, Bp, I)
    x_flat = x_tm.reshape(S * Bp, I)

    out = pl.pallas_call(
        fused_kernel,
        out_shape=jax.ShapeDtypeStruct((Bp, R), jnp.float32),
        grid_spec=pltpu.PrefetchScalarGridSpec(
            num_scalar_prefetch=0,
            grid=(1,),
            in_specs=[
                pl.BlockSpec((S * Bp, I), lambda i: (0, 0)),     # x, time-major flat
                pl.BlockSpec((I, 4 * Hp), lambda i: (0, 0)),     # W_ih^T (gate-padded), f32
                pl.BlockSpec((Hp, 4 * Hp), lambda i: (0, 0)),    # W_hh^T (gate-padded), bf16
                pl.BlockSpec((1, 4 * Hp), lambda i: (0, 0)),     # combined bias
                pl.BlockSpec((Hp, Hm), lambda i: (0, 0)),        # W1 (row-padded)
                pl.BlockSpec((1, Hm), lambda i: (0, 0)),         # b1
                pl.BlockSpec((Hm, R), lambda i: (0, 0)),         # W2
                pl.BlockSpec((1, R), lambda i: (0, 0)),          # b2
            ],
            out_specs=pl.BlockSpec((Bp, R), lambda i: (0, 0)),
            scratch_shapes=[pltpu.VMEM((S * Bp, 4 * Hp), jnp.float32)],  # hoisted projection
        ),
        compiler_params=pltpu.CompilerParams(dimension_semantics=("arbitrary",)),
    )(x_flat, prepped["wx"], prepped["wh"], prepped["b"],
      prepped["w1"], prepped["b1"], prepped["w2"], prepped["b2"])
    return out[:B]


# ----------------------------- Pure-JAX reference (correctness check) -----------------------------
def reference_forward(x, p):
    B, S, I = x.shape
    H = p["w_hh"].shape[1]

    def step(carry, x_t):
        h, c = carry
        gates = x_t @ p["w_ih"].T + p["b_ih"] + h @ p["w_hh"].T + p["b_hh"]
        i_g = jax.nn.sigmoid(gates[:, 0 * H:1 * H])
        f_g = jax.nn.sigmoid(gates[:, 1 * H:2 * H])
        g_g = jnp.tanh(gates[:, 2 * H:3 * H])
        o_g = jax.nn.sigmoid(gates[:, 3 * H:4 * H])
        c = f_g * c + i_g * g_g
        h = o_g * jnp.tanh(c)
        return (h, c), None

    h0 = jnp.zeros((B, H), jnp.float32)
    (h_last, _), _ = lax.scan(step, (h0, h0), jnp.transpose(x, (1, 0, 2)))
    z = jnp.maximum(h_last @ p["w1"] + p["b1"], 0.0)
    logits = z @ p["w2"] + p["b2"]
    return jax.nn.softmax(logits, axis=1)


if __name__ == "__main__":
    # Shapes consistent with the module: batch=2, seq=8, input_size=8,
    # hidden_size=64 (module default), num_regimes=3.
    B, S, I, H, R = 2, 8, 8, 64, 3

    key = jax.random.PRNGKey(0)
    ks = jax.random.split(key, 9)
    k_lstm = 1.0 / jnp.sqrt(H)
    k_lin1 = 1.0 / jnp.sqrt(H)
    k_lin2 = 1.0 / jnp.sqrt(32)

    params = {
        # nn.LSTM(I, H): weight_ih (4H, I), weight_hh (4H, H), biases (4H,)
        "w_ih": jax.random.uniform(ks[0], (4 * H, I), jnp.float32, -k_lstm, k_lstm),
        "w_hh": jax.random.uniform(ks[1], (4 * H, H), jnp.float32, -k_lstm, k_lstm),
        "b_ih": jax.random.uniform(ks[2], (4 * H,), jnp.float32, -k_lstm, k_lstm),
        "b_hh": jax.random.uniform(ks[3], (4 * H,), jnp.float32, -k_lstm, k_lstm),
        # nn.Linear(H, 32) stored transposed as (H, 32); nn.Linear(32, R) as (32, R)
        "w1": jax.random.uniform(ks[4], (H, 32), jnp.float32, -k_lin1, k_lin1),
        "b1": jax.random.uniform(ks[5], (32,), jnp.float32, -k_lin1, k_lin1),
        "w2": jax.random.uniform(ks[6], (32, R), jnp.float32, -k_lin2, k_lin2),
        "b2": jax.random.uniform(ks[7], (R,), jnp.float32, -k_lin2, k_lin2),
    }

    x = jax.random.normal(ks[8], (B, S, I), jnp.float32)

    prepped = prepare_params(params)                 # one-time weight prep (off serving path)
    fwd = jax.jit(market_regime_detector)

    out = jax.block_until_ready(fwd(x, prepped))
    ref = jax.block_until_ready(reference_forward(x, params))

    assert out.shape == (B, R)
    # Tolerance relaxed vs. pure-f32 because the recurrent h@Wh matmul uses bf16 operands
    # (f32 accumulation); observed drift is ~1e-3 on softmax probabilities.
    assert jnp.allclose(out, ref, atol=2e-2, rtol=2e-2), (out, ref)
    assert jnp.allclose(jnp.sum(out, axis=1), 1.0, atol=1e-4)

    print("KERNEL_OK")
</pallas_src>

<mosaic_0001>
module attributes {stable_mosaic.version = 11 : i64} {
  func.func @fused_kernel(%arg0: i32, %arg1: memref<64x8xf32, #tpu.memory_space<vmem>>, %arg2: memref<8x512xf32, #tpu.memory_space<vmem>>, %arg3: memref<128x512xbf16, #tpu.memory_space<vmem>>, %arg4: memref<1x512xf32, #tpu.memory_space<vmem>>, %arg5: memref<128x32xf32, #tpu.memory_space<vmem>>, %arg6: memref<1x32xf32, #tpu.memory_space<vmem>>, %arg7: memref<32x3xf32, #tpu.memory_space<vmem>>, %arg8: memref<1x3xf32, #tpu.memory_space<vmem>>, %arg9: memref<8x3xf32, #tpu.memory_space<vmem>>, %arg10: memref<64x512xf32, #tpu.memory_space<vmem>>) attributes {dimension_semantics = [#tpu.dimension_semantics<arbitrary>], iteration_bounds = array<i64: 1>, scalar_prefetch = 0 : i64, scratch_operands = 1 : i64, tpu.core_type = #tpu.core_type<tc>, window_params = [{pipeline_mode = #tpu.pipeline_mode<synchronous>, transform_indices = @transform_0, window_bounds = array<i64: 64, 8>}, {pipeline_mode = #tpu.pipeline_mode<synchronous>, transform_indices = @transform_1, window_bounds = array<i64: 8, 512>}, {pipeline_mode = #tpu.pipeline_mode<synchronous>, transform_indices = @transform_2, window_bounds = array<i64: 128, 512>}, {pipeline_mode = #tpu.pipeline_mode<synchronous>, transform_indices = @transform_3, window_bounds = array<i64: 1, 512>}, {pipeline_mode = #tpu.pipeline_mode<synchronous>, transform_indices = @transform_4, window_bounds = array<i64: 128, 32>}, {pipeline_mode = #tpu.pipeline_mode<synchronous>, transform_indices = @transform_5, window_bounds = array<i64: 1, 32>}, {pipeline_mode = #tpu.pipeline_mode<synchronous>, transform_indices = @transform_6, window_bounds = array<i64: 32, 3>}, {pipeline_mode = #tpu.pipeline_mode<synchronous>, transform_indices = @transform_7, window_bounds = array<i64: 1, 3>}, {pipeline_mode = #tpu.pipeline_mode<synchronous>, transform_indices = @transform_8, window_bounds = array<i64: 8, 3>}]} {
    %c0 = arith.constant 0 : index
    %c0_0 = arith.constant 0 : index
    %0 = vector.load %arg1[%c0, %c0_0] : memref<64x8xf32, #tpu.memory_space<vmem>>, vector<64x8xf32>
    %c0_1 = arith.constant 0 : index
    %c0_2 = arith.constant 0 : index
    %1 = vector.load %arg2[%c0_1, %c0_2] : memref<8x512xf32, #tpu.memory_space<vmem>>, vector<8x512xf32>
    %cst = arith.constant dense<0.000000e+00> : vector<64x512xf32>
    %2 = tpu.matmul %0, %1, %cst {dimension_numbers = #tpu.dot_dimension_numbers<[1], [0], [0], [1], [0, 0, 1, 1], [], []>} : vector<64x8xf32>, vector<8x512xf32>, vector<64x512xf32> -> vector<64x512xf32>
    %c0_3 = arith.constant 0 : index
    %c0_4 = arith.constant 0 : index
    %3 = vector.load %arg4[%c0_3, %c0_4] : memref<1x512xf32, #tpu.memory_space<vmem>>, vector<1x512xf32>
    %4 = vector.broadcast %3 : vector<1x512xf32> to vector<64x512xf32>
    %5 = arith.addf %2, %4 : vector<64x512xf32>
    %c0_5 = arith.constant 0 : index
    %c0_6 = arith.constant 0 : index
    %6 = vector.load %arg10[%c0_5, %c0_6] : memref<64x512xf32, #tpu.memory_space<vmem>>, vector<64x512xf32>
    tpu.vector_store %arg10[%c0_5, %c0_6], %5 {strides = array<i32>} : memref<64x512xf32, #tpu.memory_space<vmem>>, vector<64x512xf32>,
    %cst_7 = arith.constant 0.000000e+00 : f32
    %7 = vector.broadcast %cst_7 : f32 to vector<8x128xf32>
    %cst_8 = arith.constant 0.000000e+00 : f32
    %8 = vector.broadcast %cst_8 : f32 to vector<8x128xf32>
    %c0_i32 = arith.constant 0 : i32
    %c8_i32 = arith.constant 8 : i32
    %9 = arith.muli %c0_i32, %c8_i32 : i32
    %10 = tpu.assume_multiple %9, 8 : i32
    %11 = arith.index_cast %10 : i32 to index
    %c0_9 = arith.constant 0 : index
    %12 = vector.load %arg10[%11, %c0_9] : memref<64x512xf32, #tpu.memory_space<vmem>>, vector<8x512xf32>
    %13 = arith.truncf %7 : vector<8x128xf32> to vector<8x128xbf16>
    %c0_10 = arith.constant 0 : index
    %c0_11 = arith.constant 0 : index
    %14 = vector.load %arg3[%c0_10, %c0_11] : memref<128x512xbf16, #tpu.memory_space<vmem>>, vector<128x512xbf16>
    %cst_12 = arith.constant dense<0.000000e+00> : vector<8x512xf32>
    %15 = tpu.matmul %13, %14, %cst_12 {dimension_numbers = #tpu.dot_dimension_numbers<[1], [0], [0], [1], [0, 0, 1, 1], [], []>} : vector<8x128xbf16>, vector<128x512xbf16>, vector<8x512xf32> -> vector<8x512xf32>
    %16 = arith.addf %12, %15 : vector<8x512xf32>
    %17 = vector.extract_strided_slice %16 {offsets = [0, 0], sizes = [8, 128], strides = [1, 1]} : vector<8x512xf32> to vector<8x128xf32>
    %18 = arith.negf %17 : vector<8x128xf32>
    %19 = math.exp %18 : vector<8x128xf32>
    %cst_13 = arith.constant 1.000000e+00 : f32
    %20 = vector.broadcast %cst_13 : f32 to vector<8x128xf32>
    %21 = arith.addf %20, %19 : vector<8x128xf32>
    %22 = arith.divf %20, %21 : vector<8x128xf32>
    %23 = vector.extract_strided_slice %16 {offsets = [0, 128], sizes = [8, 128], strides = [1, 1]} : vector<8x512xf32> to vector<8x128xf32>
    %24 = arith.negf %23 : vector<8x128xf32>
    %25 = math.exp %24 : vector<8x128xf32>
    %cst_14 = arith.constant 1.000000e+00 : f32
    %26 = vector.broadcast %cst_14 : f32 to vector<8x128xf32>
    %27 = arith.addf %26, %25 : vector<8x128xf32>
    %28 = arith.divf %26, %27 : vector<8x128xf32>
    %29 = vector.extract_strided_slice %16 {offsets = [0, 256], sizes = [8, 128], strides = [1, 1]} : vector<8x512xf32> to vector<8x128xf32>
    %30 = math.tanh %29 : vector<8x128xf32>
    %31 = vector.extract_strided_slice %16 {offsets = [0, 384], sizes = [8, 128], strides = [1, 1]} : vector<8x512xf32> to vector<8x128xf32>
    %32 = arith.negf %31 : vector<8x128xf32>
    %33 = math.exp %32 : vector<8x128xf32>
    %cst_15 = arith.constant 1.000000e+00 : f32
    %34 = vector.broadcast %cst_15 : f32 to vector<8x128xf32>
    %35 = arith.addf %34, %33 : vector<8x128xf32>
    %36 = arith.divf %34, %35 : vector<8x128xf32>
    %37 = arith.mulf %28, %8 : vector<8x128xf32>
    %38 = arith.mulf %22, %30 : vector<8x128xf32>
    %39 = arith.addf %37, %38 : vector<8x128xf32>
    %40 = math.tanh %39 : vector<8x128xf32>
    %41 = arith.mulf %36, %40 : vector<8x128xf32>
    %c1_i32 = arith.constant 1 : i32
    %c8_i32_16 = arith.constant 8 : i32
    %42 = arith.muli %c1_i32, %c8_i32_16 : i32
    %43 = tpu.assume_multiple %42, 8 : i32
    %44 = arith.index_cast %43 : i32 to index
    %c0_17 = arith.constant 0 : index
    %45 = vector.load %arg10[%44, %c0_17] : memref<64x512xf32, #tpu.memory_space<vmem>>, vector<8x512xf32>
    %46 = arith.truncf %41 : vector<8x128xf32> to vector<8x128xbf16>
    %c0_18 = arith.constant 0 : index
    %c0_19 = arith.constant 0 : index
    %47 = vector.load %arg3[%c0_18, %c0_19] : memref<128x512xbf16, #tpu.memory_space<vmem>>, vector<128x512xbf16>
    %cst_20 = arith.constant dense<0.000000e+00> : vector<8x512xf32>
    %48 = tpu.matmul %46, %47, %cst_20 {dimension_numbers = #tpu.dot_dimension_numbers<[1], [0], [0], [1], [0, 0, 1, 1], [], []>} : vector<8x128xbf16>, vector<128x512xbf16>, vector<8x512xf32> -> vector<8x512xf32>
    %49 = arith.addf %45, %48 : vector<8x512xf32>
    %50 = vector.extract_strided_slice %49 {offsets = [0, 0], sizes = [8, 128], strides = [1, 1]} : vector<8x512xf32> to vector<8x128xf32>
    %51 = arith.negf %50 : vector<8x128xf32>
    %52 = math.exp %51 : vector<8x128xf32>
    %cst_21 = arith.constant 1.000000e+00 : f32
    %53 = vector.broadcast %cst_21 : f32 to vector<8x128xf32>
    %54 = arith.addf %53, %52 : vector<8x128xf32>
    %55 = arith.divf %53, %54 : vector<8x128xf32>
    %56 = vector.extract_strided_slice %49 {offsets = [0, 128], sizes = [8, 128], strides = [1, 1]} : vector<8x512xf32> to vector<8x128xf32>
    %57 = arith.negf %56 : vector<8x128xf32>
    %58 = math.exp %57 : vector<8x128xf32>
    %cst_22 = arith.constant 1.000000e+00 : f32
    %59 = vector.broadcast %cst_22 : f32 to vector<8x128xf32>
    %60 = arith.addf %59, %58 : vector<8x128xf32>
    %61 = arith.divf %59, %60 : vector<8x128xf32>
    %62 = vector.extract_strided_slice %49 {offsets = [0, 256], sizes = [8, 128], strides = [1, 1]} : vector<8x512xf32> to vector<8x128xf32>
    %63 = math.tanh %62 : vector<8x128xf32>
    %64 = vector.extract_strided_slice %49 {offsets = [0, 384], sizes = [8, 128], strides = [1, 1]} : vector<8x512xf32> to vector<8x128xf32>
    %65 = arith.negf %64 : vector<8x128xf32>
    %66 = math.exp %65 : vector<8x128xf32>
    %cst_23 = arith.constant 1.000000e+00 : f32
    %67 = vector.broadcast %cst_23 : f32 to vector<8x128xf32>
    %68 = arith.addf %67, %66 : vector<8x128xf32>
    %69 = arith.divf %67, %68 : vector<8x128xf32>
    %70 = arith.mulf %61, %39 : vector<8x128xf32>
    %71 = arith.mulf %55, %63 : vector<8x128xf32>
    %72 = arith.addf %70, %71 : vector<8x128xf32>
    %73 = math.tanh %72 : vector<8x128xf32>
    %74 = arith.mulf %69, %73 : vector<8x128xf32>
    %c2_i32 = arith.constant 2 : i32
    %c8_i32_24 = arith.constant 8 : i32
    %75 = arith.muli %c2_i32, %c8_i32_24 : i32
    %76 = tpu.assume_multiple %75, 8 : i32
    %77 = arith.index_cast %76 : i32 to index
    %c0_25 = arith.constant 0 : index
    %78 = vector.load %arg10[%77, %c0_25] : memref<64x512xf32, #tpu.memory_space<vmem>>, vector<8x512xf32>
    %79 = arith.truncf %74 : vector<8x128xf32> to vector<8x128xbf16>
    %c0_26 = arith.constant 0 : index
    %c0_27 = arith.constant 0 : index
    %80 = vector.load %arg3[%c0_26, %c0_27] : memref<128x512xbf16, #tpu.memory_space<vmem>>, vector<128x512xbf16>
    %cst_28 = arith.constant dense<0.000000e+00> : vector<8x512xf32>
    %81 = tpu.matmul %79, %80, %cst_28 {dimension_numbers = #tpu.dot_dimension_numbers<[1], [0], [0], [1], [0, 0, 1, 1], [], []>} : vector<8x128xbf16>, vector<128x512xbf16>, vector<8x512xf32> -> vector<8x512xf32>
    %82 = arith.addf %78, %81 : vector<8x512xf32>
    %83 = vector.extract_strided_slice %82 {offsets = [0, 0], sizes = [8, 128], strides = [1, 1]} : vector<8x512xf32> to vector<8x128xf32>
    %84 = arith.negf %83 : vector<8x128xf32>
    %85 = math.exp %84 : vector<8x128xf32>
    %cst_29 = arith.constant 1.000000e+00 : f32
    %86 = vector.broadcast %cst_29 : f32 to vector<8x128xf32>
    %87 = arith.addf %86, %85 : vector<8x128xf32>
    %88 = arith.divf %86, %87 : vector<8x128xf32>
    %89 = vector.extract_strided_slice %82 {offsets = [0, 128], sizes = [8, 128], strides = [1, 1]} : vector<8x512xf32> to vector<8x128xf32>
    %90 = arith.negf %89 : vector<8x128xf32>
    %91 = math.exp %90 : vector<8x128xf32>
    %cst_30 = arith.constant 1.000000e+00 : f32
    %92 = vector.broadcast %cst_30 : f32 to vector<8x128xf32>
    %93 = arith.addf %92, %91 : vector<8x128xf32>
    %94 = arith.divf %92, %93 : vector<8x128xf32>
    %95 = vector.extract_strided_slice %82 {offsets = [0, 256], sizes = [8, 128], strides = [1, 1]} : vector<8x512xf32> to vector<8x128xf32>
    %96 = math.tanh %95 : vector<8x128xf32>
    %97 = vector.extract_strided_slice %82 {offsets = [0, 384], sizes = [8, 128], strides = [1, 1]} : vector<8x512xf32> to vector<8x128xf32>
    %98 = arith.negf %97 : vector<8x128xf32>
    %99 = math.exp %98 : vector<8x128xf32>
    %cst_31 = arith.constant 1.000000e+00 : f32
    %100 = vector.broadcast %cst_31 : f32 to vector<8x128xf32>
    %101 = arith.addf %100, %99 : vector<8x128xf32>
    %102 = arith.divf %100, %101 : vector<8x128xf32>
    %103 = arith.mulf %94, %72 : vector<8x128xf32>
    %104 = arith.mulf %88, %96 : vector<8x128xf32>
    %105 = arith.addf %103, %104 : vector<8x128xf32>
    %106 = math.tanh %105 : vector<8x128xf32>
    %107 = arith.mulf %102, %106 : vector<8x128xf32>
    %c3_i32 = arith.constant 3 : i32
    %c8_i32_32 = arith.constant 8 : i32
    %108 = arith.muli %c3_i32, %c8_i32_32 : i32
    %109 = tpu.assume_multiple %108, 8 : i32
    %110 = arith.index_cast %109 : i32 to index
    %c0_33 = arith.constant 0 : index
    %111 = vector.load %arg10[%110, %c0_33] : memref<64x512xf32, #tpu.memory_space<vmem>>, vector<8x512xf32>
    %112 = arith.truncf %107 : vector<8x128xf32> to vector<8x128xbf16>
    %c0_34 = arith.constant 0 : index
    %c0_35 = arith.constant 0 : index
    %113 = vector.load %arg3[%c0_34, %c0_35] : memref<128x512xbf16, #tpu.memory_space<vmem>>, vector<128x512xbf16>
    %cst_36 = arith.constant dense<0.000000e+00> : vector<8x512xf32>
    %114 = tpu.matmul %112, %113, %cst_36 {dimension_numbers = #tpu.dot_dimension_numbers<[1], [0], [0], [1], [0, 0, 1, 1], [], []>} : vector<8x128xbf16>, vector<128x512xbf16>, vector<8x512xf32> -> vector<8x512xf32>
    %115 = arith.addf %111, %114 : vector<8x512xf32>
    %116 = vector.extract_strided_slice %115 {offsets = [0, 0], sizes = [8, 128], strides = [1, 1]} : vector<8x512xf32> to vector<8x128xf32>
    %117 = arith.negf %116 : vector<8x128xf32>
    %118 = math.exp %117 : vector<8x128xf32>
    %cst_37 = arith.constant 1.000000e+00 : f32
    %119 = vector.broadcast %cst_37 : f32 to vector<8x128xf32>
    %120 = arith.addf %119, %118 : vector<8x128xf32>
    %121 = arith.divf %119, %120 : vector<8x128xf32>
    %122 = vector.extract_strided_slice %115 {offsets = [0, 128], sizes = [8, 128], strides = [1, 1]} : vector<8x512xf32> to vector<8x128xf32>
    %123 = arith.negf %122 : vector<8x128xf32>
    %124 = math.exp %123 : vector<8x128xf32>
    %cst_38 = arith.constant 1.000000e+00 : f32
    %125 = vector.broadcast %cst_38 : f32 to vector<8x128xf32>
    %126 = arith.addf %125, %124 : vector<8x128xf32>
    %127 = arith.divf %125, %126 : vector<8x128xf32>
    %128 = vector.extract_strided_slice %115 {offsets = [0, 256], sizes = [8, 128], strides = [1, 1]} : vector<8x512xf32> to vector<8x128xf32>
    %129 = math.tanh %128 : vector<8x128xf32>
    %130 = vector.extract_strided_slice %115 {offsets = [0, 384], sizes = [8, 128], strides = [1, 1]} : vector<8x512xf32> to vector<8x128xf32>
    %131 = arith.negf %130 : vector<8x128xf32>
    %132 = math.exp %131 : vector<8x128xf32>
    %cst_39 = arith.constant 1.000000e+00 : f32
    %133 = vector.broadcast %cst_39 : f32 to vector<8x128xf32>
    %134 = arith.addf %133, %132 : vector<8x128xf32>
    %135 = arith.divf %133, %134 : vector<8x128xf32>
    %136 = arith.mulf %127, %105 : vector<8x128xf32>
    %137 = arith.mulf %121, %129 : vector<8x128xf32>
    %138 = arith.addf %136, %137 : vector<8x128xf32>
    %139 = math.tanh %138 : vector<8x128xf32>
    %140 = arith.mulf %135, %139 : vector<8x128xf32>
    %c4_i32 = arith.constant 4 : i32
    %c8_i32_40 = arith.constant 8 : i32
    %141 = arith.muli %c4_i32, %c8_i32_40 : i32
    %142 = tpu.assume_multiple %141, 8 : i32
    %143 = arith.index_cast %142 : i32 to index
    %c0_41 = arith.constant 0 : index
    %144 = vector.load %arg10[%143, %c0_41] : memref<64x512xf32, #tpu.memory_space<vmem>>, vector<8x512xf32>
    %145 = arith.truncf %140 : vector<8x128xf32> to vector<8x128xbf16>
    %c0_42 = arith.constant 0 : index
    %c0_43 = arith.constant 0 : index
    %146 = vector.load %arg3[%c0_42, %c0_43] : memref<128x512xbf16, #tpu.memory_space<vmem>>, vector<128x512xbf16>
    %cst_44 = arith.constant dense<0.000000e+00> : vector<8x512xf32>
    %147 = tpu.matmul %145, %146, %cst_44 {dimension_numbers = #tpu.dot_dimension_numbers<[1], [0], [0], [1], [0, 0, 1, 1], [], []>} : vector<8x128xbf16>, vector<128x512xbf16>, vector<8x512xf32> -> vector<8x512xf32>
    %148 = arith.addf %144, %147 : vector<8x512xf32>
    %149 = vector.extract_strided_slice %148 {offsets = [0, 0], sizes = [8, 128], strides = [1, 1]} : vector<8x512xf32> to vector<8x128xf32>
    %150 = arith.negf %149 : vector<8x128xf32>
    %151 = math.exp %150 : vector<8x128xf32>
    %cst_45 = arith.constant 1.000000e+00 : f32
    %152 = vector.broadcast %cst_45 : f32 to vector<8x128xf32>
    %153 = arith.addf %152, %151 : vector<8x128xf32>
    %154 = arith.divf %152, %153 : vector<8x128xf32>
    %155 = vector.extract_strided_slice %148 {offsets = [0, 128], sizes = [8, 128], strides = [1, 1]} : vector<8x512xf32> to vector<8x128xf32>
    %156 = arith.negf %155 : vector<8x128xf32>
    %157 = math.exp %156 : vector<8x128xf32>
    %cst_46 = arith.constant 1.000000e+00 : f32
    %158 = vector.broadcast %cst_46 : f32 to vector<8x128xf32>
    %159 = arith.addf %158, %157 : vector<8x128xf32>
    %160 = arith.divf %158, %159 : vector<8x128xf32>
    %161 = vector.extract_strided_slice %148 {offsets = [0, 256], sizes = [8, 128], strides = [1, 1]} : vector<8x512xf32> to vector<8x128xf32>
    %162 = math.tanh %161 : vector<8x128xf32>
    %163 = vector.extract_strided_slice %148 {offsets = [0, 384], sizes = [8, 128], strides = [1, 1]} : vector<8x512xf32> to vector<8x128xf32>
    %164 = arith.negf %163 : vector<8x128xf32>
    %165 = math.exp %164 : vector<8x128xf32>
    %cst_47 = arith.constant 1.000000e+00 : f32
    %166 = vector.broadcast %cst_47 : f32 to vector<8x128xf32>
    %167 = arith.addf %166, %165 : vector<8x128xf32>
    %168 = arith.divf %166, %167 : vector<8x128xf32>
    %169 = arith.mulf %160, %138 : vector<8x128xf32>
    %170 = arith.mulf %154, %162 : vector<8x128xf32>
    %171 = arith.addf %169, %170 : vector<8x128xf32>
    %172 = math.tanh %171 : vector<8x128xf32>
    %173 = arith.mulf %168, %172 : vector<8x128xf32>
    %c5_i32 = arith.constant 5 : i32
    %c8_i32_48 = arith.constant 8 : i32
    %174 = arith.muli %c5_i32, %c8_i32_48 : i32
    %175 = tpu.assume_multiple %174, 8 : i32
    %176 = arith.index_cast %175 : i32 to index
    %c0_49 = arith.constant 0 : index
    %177 = vector.load %arg10[%176, %c0_49] : memref<64x512xf32, #tpu.memory_space<vmem>>, vector<8x512xf32>
    %178 = arith.truncf %173 : vector<8x128xf32> to vector<8x128xbf16>
    %c0_50 = arith.constant 0 : index
    %c0_51 = arith.constant 0 : index
    %179 = vector.load %arg3[%c0_50, %c0_51] : memref<128x512xbf16, #tpu.memory_space<vmem>>, vector<128x512xbf16>
    %cst_52 = arith.constant dense<0.000000e+00> : vector<8x512xf32>
    %180 = tpu.matmul %178, %179, %cst_52 {dimension_numbers = #tpu.dot_dimension_numbers<[1], [0], [0], [1], [0, 0, 1, 1], [], []>} : vector<8x128xbf16>, vector<128x512xbf16>, vector<8x512xf32> -> vector<8x512xf32>
    %181 = arith.addf %177, %180 : vector<8x512xf32>
    %182 = vector.extract_strided_slice %181 {offsets = [0, 0], sizes = [8, 128], strides = [1, 1]} : vector<8x512xf32> to vector<8x128xf32>
    %183 = arith.negf %182 : vector<8x128xf32>
    %184 = math.exp %183 : vector<8x128xf32>
    %cst_53 = arith.constant 1.000000e+00 : f32
    %185 = vector.broadcast %cst_53 : f32 to vector<8x128xf32>
    %186 = arith.addf %185, %184 : vector<8x128xf32>
    %187 = arith.divf %185, %186 : vector<8x128xf32>
    %188 = vector.extract_strided_slice %181 {offsets = [0, 128], sizes = [8, 128], strides = [1, 1]} : vector<8x512xf32> to vector<8x128xf32>
    %189 = arith.negf %188 : vector<8x128xf32>
    %190 = math.exp %189 : vector<8x128xf32>
    %cst_54 = arith.constant 1.000000e+00 : f32
    %191 = vector.broadcast %cst_54 : f32 to vector<8x128xf32>
    %192 = arith.addf %191, %190 : vector<8x128xf32>
    %193 = arith.divf %191, %192 : vector<8x128xf32>
    %194 = vector.extract_strided_slice %181 {offsets = [0, 256], sizes = [8, 128], strides = [1, 1]} : vector<8x512xf32> to vector<8x128xf32>
    %195 = math.tanh %194 : vector<8x128xf32>
    %196 = vector.extract_strided_slice %181 {offsets = [0, 384], sizes = [8, 128], strides = [1, 1]} : vector<8x512xf32> to vector<8x128xf32>
    %197 = arith.negf %196 : vector<8x128xf32>
    %198 = math.exp %197 : vector<8x128xf32>
    %cst_55 = arith.constant 1.000000e+00 : f32
    %199 = vector.broadcast %cst_55 : f32 to vector<8x128xf32>
    %200 = arith.addf %199, %198 : vector<8x128xf32>
    %201 = arith.divf %199, %200 : vector<8x128xf32>
    %202 = arith.mulf %193, %171 : vector<8x128xf32>
    %203 = arith.mulf %187, %195 : vector<8x128xf32>
    %204 = arith.addf %202, %203 : vector<8x128xf32>
    %205 = math.tanh %204 : vector<8x128xf32>
    %206 = arith.mulf %201, %205 : vector<8x128xf32>
    %c6_i32 = arith.constant 6 : i32
    %c8_i32_56 = arith.constant 8 : i32
    %207 = arith.muli %c6_i32, %c8_i32_56 : i32
    %208 = tpu.assume_multiple %207, 8 : i32
    %209 = arith.index_cast %208 : i32 to index
    %c0_57 = arith.constant 0 : index
    %210 = vector.load %arg10[%209, %c0_57] : memref<64x512xf32, #tpu.memory_space<vmem>>, vector<8x512xf32>
    %211 = arith.truncf %206 : vector<8x128xf32> to vector<8x128xbf16>
    %c0_58 = arith.constant 0 : index
    %c0_59 = arith.constant 0 : index
    %212 = vector.load %arg3[%c0_58, %c0_59] : memref<128x512xbf16, #tpu.memory_space<vmem>>, vector<128x512xbf16>
    %cst_60 = arith.constant dense<0.000000e+00> : vector<8x512xf32>
    %213 = tpu.matmul %211, %212, %cst_60 {dimension_numbers = #tpu.dot_dimension_numbers<[1], [0], [0], [1], [0, 0, 1, 1], [], []>} : vector<8x128xbf16>, vector<128x512xbf16>, vector<8x512xf32> -> vector<8x512xf32>
    %214 = arith.addf %210, %213 : vector<8x512xf32>
    %215 = vector.extract_strided_slice %214 {offsets = [0, 0], sizes = [8, 128], strides = [1, 1]} : vector<8x512xf32> to vector<8x128xf32>
    %216 = arith.negf %215 : vector<8x128xf32>
    %217 = math.exp %216 : vector<8x128xf32>
    %cst_61 = arith.constant 1.000000e+00 : f32
    %218 = vector.broadcast %cst_61 : f32 to vector<8x128xf32>
    %219 = arith.addf %218, %217 : vector<8x128xf32>
    %220 = arith.divf %218, %219 : vector<8x128xf32>
    %221 = vector.extract_strided_slice %214 {offsets = [0, 128], sizes = [8, 128], strides = [1, 1]} : vector<8x512xf32> to vector<8x128xf32>
    %222 = arith.negf %221 : vector<8x128xf32>
    %223 = math.exp %222 : vector<8x128xf32>
    %cst_62 = arith.constant 1.000000e+00 : f32
    %224 = vector.broadcast %cst_62 : f32 to vector<8x128xf32>
    %225 = arith.addf %224, %223 : vector<8x128xf32>
    %226 = arith.divf %224, %225 : vector<8x128xf32>
    %227 = vector.extract_strided_slice %214 {offsets = [0, 256], sizes = [8, 128], strides = [1, 1]} : vector<8x512xf32> to vector<8x128xf32>
    %228 = math.tanh %227 : vector<8x128xf32>
    %229 = vector.extract_strided_slice %214 {offsets = [0, 384], sizes = [8, 128], strides = [1, 1]} : vector<8x512xf32> to vector<8x128xf32>
    %230 = arith.negf %229 : vector<8x128xf32>
    %231 = math.exp %230 : vector<8x128xf32>
    %cst_63 = arith.constant 1.000000e+00 : f32
    %232 = vector.broadcast %cst_63 : f32 to vector<8x128xf32>
    %233 = arith.addf %232, %231 : vector<8x128xf32>
    %234 = arith.divf %232, %233 : vector<8x128xf32>
    %235 = arith.mulf %226, %204 : vector<8x128xf32>
    %236 = arith.mulf %220, %228 : vector<8x128xf32>
    %237 = arith.addf %235, %236 : vector<8x128xf32>
    %238 = math.tanh %237 : vector<8x128xf32>
    %239 = arith.mulf %234, %238 : vector<8x128xf32>
    %c7_i32 = arith.constant 7 : i32
    %c8_i32_64 = arith.constant 8 : i32
    %240 = arith.muli %c7_i32, %c8_i32_64 : i32
    %241 = tpu.assume_multiple %240, 8 : i32
    %242 = arith.index_cast %241 : i32 to index
    %c0_65 = arith.constant 0 : index
    %243 = vector.load %arg10[%242, %c0_65] : memref<64x512xf32, #tpu.memory_space<vmem>>, vector<8x512xf32>
    %244 = arith.truncf %239 : vector<8x128xf32> to vector<8x128xbf16>
    %c0_66 = arith.constant 0 : index
    %c0_67 = arith.constant 0 : index
    %245 = vector.load %arg3[%c0_66, %c0_67] : memref<128x512xbf16, #tpu.memory_space<vmem>>, vector<128x512xbf16>
    %cst_68 = arith.constant dense<0.000000e+00> : vector<8x512xf32>
    %246 = tpu.matmul %244, %245, %cst_68 {dimension_numbers = #tpu.dot_dimension_numbers<[1], [0], [0], [1], [0, 0, 1, 1], [], []>} : vector<8x128xbf16>, vector<128x512xbf16>, vector<8x512xf32> -> vector<8x512xf32>
    %247 = arith.addf %243, %246 : vector<8x512xf32>
    %248 = vector.extract_strided_slice %247 {offsets = [0, 0], sizes = [8, 128], strides = [1, 1]} : vector<8x512xf32> to vector<8x128xf32>
    %249 = arith.negf %248 : vector<8x128xf32>
    %250 = math.exp %249 : vector<8x128xf32>
    %cst_69 = arith.constant 1.000000e+00 : f32
    %251 = vector.broadcast %cst_69 : f32 to vector<8x128xf32>
    %252 = arith.addf %251, %250 : vector<8x128xf32>
    %253 = arith.divf %251, %252 : vector<8x128xf32>
    %254 = vector.extract_strided_slice %247 {offsets = [0, 128], sizes = [8, 128], strides = [1, 1]} : vector<8x512xf32> to vector<8x128xf32>
    %255 = arith.negf %254 : vector<8x128xf32>
    %256 = math.exp %255 : vector<8x128xf32>
    %cst_70 = arith.constant 1.000000e+00 : f32
    %257 = vector.broadcast %cst_70 : f32 to vector<8x128xf32>
    %258 = arith.addf %257, %256 : vector<8x128xf32>
    %259 = arith.divf %257, %258 : vector<8x128xf32>
    %260 = vector.extract_strided_slice %247 {offsets = [0, 256], sizes = [8, 128], strides = [1, 1]} : vector<8x512xf32> to vector<8x128xf32>
    %261 = math.tanh %260 : vector<8x128xf32>
    %262 = vector.extract_strided_slice %247 {offsets = [0, 384], sizes = [8, 128], strides = [1, 1]} : vector<8x512xf32> to vector<8x128xf32>
    %263 = arith.negf %262 : vector<8x128xf32>
    %264 = math.exp %263 : vector<8x128xf32>
    %cst_71 = arith.constant 1.000000e+00 : f32
    %265 = vector.broadcast %cst_71 : f32 to vector<8x128xf32>
    %266 = arith.addf %265, %264 : vector<8x128xf32>
    %267 = arith.divf %265, %266 : vector<8x128xf32>
    %268 = arith.mulf %259, %237 : vector<8x128xf32>
    %269 = arith.mulf %253, %261 : vector<8x128xf32>
    %270 = arith.addf %268, %269 : vector<8x128xf32>
    %271 = math.tanh %270 : vector<8x128xf32>
    %272 = arith.mulf %267, %271 : vector<8x128xf32>
    %c8_i32_72 = arith.constant 8 : i32
    %c0_73 = arith.constant 0 : index
    %c0_74 = arith.constant 0 : index
    %273 = vector.load %arg5[%c0_73, %c0_74] : memref<128x32xf32, #tpu.memory_space<vmem>>, vector<128x32xf32>
    %cst_75 = arith.constant dense<0.000000e+00> : vector<8x32xf32>
    %274 = tpu.matmul %272, %273, %cst_75 {dimension_numbers = #tpu.dot_dimension_numbers<[1], [0], [0], [1], [0, 0, 1, 1], [], []>} : vector<8x128xf32>, vector<128x32xf32>, vector<8x32xf32> -> vector<8x32xf32>
    %c0_76 = arith.constant 0 : index
    %c0_77 = arith.constant 0 : index
    %275 = vector.load %arg6[%c0_76, %c0_77] : memref<1x32xf32, #tpu.memory_space<vmem>>, vector<1x32xf32>
    %276 = vector.broadcast %275 : vector<1x32xf32> to vector<8x32xf32>
    %277 = arith.addf %274, %276 : vector<8x32xf32>
    %cst_78 = arith.constant 0.000000e+00 : f32
    %278 = vector.broadcast %cst_78 : f32 to vector<8x32xf32>
    %279 = arith.maximumf %277, %278 : vector<8x32xf32>
    %c0_79 = arith.constant 0 : index
    %c0_80 = arith.constant 0 : index
    %280 = vector.load %arg7[%c0_79, %c0_80] : memref<32x3xf32, #tpu.memory_space<vmem>>, vector<32x3xf32>
    %cst_81 = arith.constant dense<0.000000e+00> : vector<8x3xf32>
    %281 = tpu.matmul %279, %280, %cst_81 {dimension_numbers = #tpu.dot_dimension_numbers<[1], [0], [0], [1], [0, 0, 1, 1], [], []>} : vector<8x32xf32>, vector<32x3xf32>, vector<8x3xf32> -> vector<8x3xf32>
    %c0_82 = arith.constant 0 : index
    %c0_83 = arith.constant 0 : index
    %282 = vector.load %arg8[%c0_82, %c0_83] : memref<1x3xf32, #tpu.memory_space<vmem>>, vector<1x3xf32>
    %283 = vector.broadcast %282 : vector<1x3xf32> to vector<8x3xf32>
    %284 = arith.addf %281, %283 : vector<8x3xf32>
    %cst_84 = arith.constant dense<0xFF800000> : vector<8xf32>
    %285 = vector.multi_reduction <maximumf>, %284, %cst_84 [1] : vector<8x3xf32> to vector<8xf32>
    %286 = vector.shape_cast %285 : vector<8xf32> to vector<8x1xf32>
    %287 = vector.broadcast %286 : vector<8x1xf32> to vector<8x3xf32>
    %288 = arith.subf %284, %287 : vector<8x3xf32>
    %289 = math.exp %288 : vector<8x3xf32>
    %cst_85 = arith.constant dense<0.000000e+00> : vector<8xf32>
    %290 = vector.multi_reduction <add>, %289, %cst_85 [1] : vector<8x3xf32> to vector<8xf32>
    %291 = vector.shape_cast %290 : vector<8xf32> to vector<8x1xf32>
    %292 = tpu.reciprocal %291 {approx = true} : vector<8x1xf32> -> vector<8x1xf32>
    %293 = arith.mulf %291, %292 : vector<8x1xf32>
    %cst_86 = arith.constant 2.000000e+00 : f32
    %294 = vector.broadcast %cst_86 : f32 to vector<8x1xf32>
    %295 = arith.subf %294, %293 : vector<8x1xf32>
    %296 = arith.mulf %292, %295 : vector<8x1xf32>
    %297 = vector.broadcast %296 : vector<8x1xf32> to vector<8x3xf32>
    %298 = arith.mulf %289, %297 : vector<8x3xf32>
    %c0_87 = arith.constant 0 : index
    %c0_88 = arith.constant 0 : index
    %299 = vector.load %arg9[%c0_87, %c0_88] : memref<8x3xf32, #tpu.memory_space<vmem>>, vector<8x3xf32>
    tpu.vector_store %arg9[%c0_87, %c0_88], %298 {strides = array<i32>} : memref<8x3xf32, #tpu.memory_space<vmem>>, vector<8x3xf32>,
    return
  }
  func.func @transform_0(%arg0: i32) -> (i32, i32) {
    %c0_i32 = arith.constant 0 : i32
    %c0_i32_0 = arith.constant 0 : i32
    %c0_i32_1 = arith.constant 0 : i32
    return %c0_i32, %c0_i32_0 : i32, i32
  }
  func.func @transform_1(%arg0: i32) -> (i32, i32) {
    %c0_i32 = arith.constant 0 : i32
    %c0_i32_0 = arith.constant 0 : i32
    %c0_i32_1 = arith.constant 0 : i32
    return %c0_i32, %c0_i32_0 : i32, i32
  }
  func.func @transform_2(%arg0: i32) -> (i32, i32) {
    %c0_i32 = arith.constant 0 : i32
    %c0_i32_0 = arith.constant 0 : i32
    %c0_i32_1 = arith.constant 0 : i32
    return %c0_i32, %c0_i32_0 : i32, i32
  }
  func.func @transform_3(%arg0: i32) -> (i32, i32) {
    %c0_i32 = arith.constant 0 : i32
    %c0_i32_0 = arith.constant 0 : i32
    %c0_i32_1 = arith.constant 0 : i32
    return %c0_i32, %c0_i32_0 : i32, i32
  }
  func.func @transform_4(%arg0: i32) -> (i32, i32) {
    %c0_i32 = arith.constant 0 : i32
    %c0_i32_0 = arith.constant 0 : i32
    %c0_i32_1 = arith.constant 0 : i32
    return %c0_i32, %c0_i32_0 : i32, i32
  }
  func.func @transform_5(%arg0: i32) -> (i32, i32) {
    %c0_i32 = arith.constant 0 : i32
    %c0_i32_0 = arith.constant 0 : i32
    %c0_i32_1 = arith.constant 0 : i32
    return %c0_i32, %c0_i32_0 : i32, i32
  }
  func.func @transform_6(%arg0: i32) -> (i32, i32) {
    %c0_i32 = arith.constant 0 : i32
    %c0_i32_0 = arith.constant 0 : i32
    %c0_i32_1 = arith.constant 0 : i32
    return %c0_i32, %c0_i32_0 : i32, i32
  }
  func.func @transform_7(%arg0: i32) -> (i32, i32) {
    %c0_i32 = arith.constant 0 : i32
    %c0_i32_0 = arith.constant 0 : i32
    %c0_i32_1 = arith.constant 0 : i32
    return %c0_i32, %c0_i32_0 : i32, i32
  }
  func.func @transform_8(%arg0: i32) -> (i32, i32) {
    %c0_i32 = arith.constant 0 : i32
    %c0_i32_0 = arith.constant 0 : i32
    %c0_i32_1 = arith.constant 0 : i32
    return %c0_i32, %c0_i32_0 : i32, i32
  }
}

</mosaic_0001>

<bundles_post_ra>
// kernel: market_regime_detector.1
= control target key start
LH: loop header
LB: loop body
LE: loop exit
PB: predicated region body
PF: predicated region fallthrough
CT: control target
= control target key end

     0   :  { %v2974_v3 = vmov 0.0   ;;  %vm64_vm0 = vcmask 64512   ;;  %v2976_v45 = vmov 0   ;;  %v44_v46 = vlaneseq  ;;  %s2965_s1 = inlined_call_operand.vmem [shape: f32[8,512], index: 1, kind: input, shape index: {}]   ;;  %s2966_s0 = inlined_call_operand.vmem [shape: f32[64,8], index: 0, kind: input, shape index: {}]   ;;  %s2967_s2 = inlined_call_operand.vmem [shape: bf16[128,512], index: 2, kind: input, shape index: {}]   ;;  %s2968_s3 = inlined_call_operand.vmem [shape: f32[1,512], index: 3, kind: input, shape index: {}]   ;;  %s2969_s4 = inlined_call_operand.vmem [shape: f32[128,32], index: 4, kind: input, shape index: {}]   ;;  %s2970_s6 = inlined_call_operand.vmem [shape: f32[32,3], index: 6, kind: input, shape index: {}]   ;;  %s2971_s5 = inlined_call_operand.vmem [shape: f32[1,32], index: 5, kind: input, shape index: {}]   ;;  %s2972_s7 = inlined_call_operand.vmem [shape: f32[1,3], index: 7, kind: input, shape index: {}]   ;;  %s2973_s8 = inlined_call_operand.vmem [shape: f32[8,3], index: 8, kind: output, shape index: {}]  }
   0x1   :  { %v39_v0 = vld [vmem:[%s2965_s1 + $0x8] sm:$0xff]  ;;  %v41_v1 = vld [vmem:[%s2965_s1 + $0x18] sm:$0xff]  ;;  %v38_v2 = vld [vmem:[%s2965_s1] sm:$0xff]  ;;  %153 = vmatprep.mubr.f32.mxu0 %v2974_v3  ;;  %266 = vmatprep.mubr.f32.mxu1 %v2974_v3  ;;  %vm2080_vm1 = vmmov 0   ;;  %vm1587_vm2 = vcmask 261120   ;;  %vm1661_vm3 = vcmask 23552  }
   0x2   :  { %89 = vmatprep.subr.mxu0 %v39_v0  ;;  %202 = vmatprep.subr.mxu1 %v41_v1  ;;  %v40_v4 = vld [vmem:[%s2965_s1 + $0x10] sm:$0xff]  ;;  %v30_v5 = vld [vmem:[%s2966_s0] sm:$0xff]  ;;  %v2153_v7 = vld [vmem:[%s2967_s2 + $0xc] ss:$16 sps:$4 sm:$0xff]   ;;  %v45_v47 = vshrl.u32 %v44_v46, 7 }
   0x3   :  { %90 = vmatpush1.msra.mxu0 %v38_v2  ;;  %203 = vmatpush1.msra.mxu1 %v40_v4  ;;  %v2146_v6 = vld [vmem:[%s2967_s2 + $0x4] ss:$16 sps:$4 sm:$0xff]   ;;  %v2158_v8 = vld [vmem:[%s2967_s2] ss:$16 sps:$4 sm:$0xff]   ;;  %v2164_v9 = vld [vmem:[%s2967_s2 + $0x8] ss:$16 sps:$4 sm:$0xff]  }
   0x4   :  { %1688 = vmatmul.mubr.msk.f32.vlgmr.msra.gmra.mrb[0].mxu0 %vm64_vm0, %v30_v5  ;;  %1696 = vmatmul.mubr.msk.f32.vlgmr.msra.gmra.mrb[0].mxu1 %vm64_vm0, %v30_v5  ;;  %v31_v10 = vld [vmem:[%s2966_s0 + $0x8] sm:$0xff]  ;;  %v2175_v11 = vld [vmem:[%s2967_s2 + $0x24] ss:$16 sps:$4 sm:$0xff]   ;;  %v2187_v13 = vld [vmem:[%s2967_s2 + $0x20] ss:$16 sps:$4 sm:$0xff]   ;;  %v46_v48 = vsub.s32 0, %v45_v47 }
   0x5   :  { %546 = vmatprep.subr.bf16.mxu0 %v2146_v6  ;;  %159 = vmatprep.mubr.f32.mxu0 %v2974_v3  ;;  %v2182_v12 = vld [vmem:[%s2967_s2 + $0x2c] ss:$16 sps:$4 sm:$0xff]   ;;  %v2194_v14 = vld [vmem:[%s2967_s2 + $0x28] ss:$16 sps:$4 sm:$0xff]   ;;  %v32_v15 = vld [vmem:[%s2966_s0 + $0x10] sm:$0xff]  ;;  %v54_v49 = vsub.s32 2, %v45_v47 }
   0x6   :  { %587 = vmatprep.subr.bf16.mxu1 %v2153_v7  ;;  %547 = vmatpush1.bf16.msra.mxu0 %v2158_v8  ;;  %v2204_v16 = vld [vmem:[%s2967_s2 + $0x44] ss:$16 sps:$4 sm:$0xff]   ;;  %v2211_v17 = vld [vmem:[%s2967_s2 + $0x4c] ss:$16 sps:$4 sm:$0xff]   ;;  %v2216_v18 = vld [vmem:[%s2967_s2 + $0x40] ss:$16 sps:$4 sm:$0xff]  }
   0x7   :  { %588 = vmatpush1.bf16.msra.mxu1 %v2164_v9  ;;  %272 = vmatprep.mubr.f32.mxu1 %v2974_v3  ;;  %v2223_v19 = vld [vmem:[%s2967_s2 + $0x48] ss:$16 sps:$4 sm:$0xff]   ;;  %v2235_v21 = vld [vmem:[%s2967_s2 + $0x64] ss:$16 sps:$4 sm:$0xff]   ;;  %v2240_v22 = vld [vmem:[%s2967_s2 + $0x6c] ss:$16 sps:$4 sm:$0xff]  }
   0x8   :  { %1689 = vmatmul.mubr.msk.f32.gmra.mrb[2].mxu0 %vm64_vm0, %v31_v10  ;;  %1697 = vmatmul.mubr.msk.f32.gmra.mrb[2].mxu1 %vm64_vm0, %v31_v10  ;;  %v33_v20 = vld [vmem:[%s2966_s0 + $0x18] sm:$0xff]  ;;  %v2247_v23 = vld [vmem:[%s2967_s2 + $0x60] ss:$16 sps:$4 sm:$0xff]   ;;  %v2266_v26 = vld [vmem:[%s2967_s2 + $0x84] ss:$16 sps:$4 sm:$0xff]   ;;  %v50_v52 = vsub.s32 1, %v45_v47 }
   0x9   :  { %548 = vmatprep.subr.bf16.mxu0 %v2175_v11  ;;  %589 = vmatprep.subr.bf16.mxu1 %v2182_v12  ;;  %v2254_v24 = vld [vmem:[%s2967_s2 + $0x68] ss:$16 sps:$4 sm:$0xff]   ;;  %v34_v25 = vld [vmem:[%s2966_s0 + $0x20] sm:$0xff]  ;;  %v2271_v27 = vld [vmem:[%s2967_s2 + $0x8c] ss:$16 sps:$4 sm:$0xff]   ;;  %v58_v54 = vsub.s32 3, %v45_v47 }
   0xa   :  { %549 = vmatpush1.bf16.msra.mxu0 %v2187_v13  ;;  %165 = vmatprep.mubr.f32.mxu0 %v2974_v3  ;;  %v2278_v28 = vld [vmem:[%s2967_s2 + $0x80] ss:$16 sps:$4 sm:$0xff]   ;;  %v2285_v29 = vld [vmem:[%s2967_s2 + $0x88] ss:$16 sps:$4 sm:$0xff]   ;;  %v2295_v31 = vld [vmem:[%s2967_s2 + $0xa4] ss:$16 sps:$4 sm:$0xff]  }
   0xb   :  { %590 = vmatpush1.bf16.msra.mxu1 %v2194_v14  ;;  %278 = vmatprep.mubr.f32.mxu1 %v2974_v3  ;;  %v35_v30 = vld [vmem:[%s2966_s0 + $0x28] sm:$0xff]  ;;  %v2309_v33 = vld [vmem:[%s2967_s2 + $0xa0] ss:$16 sps:$4 sm:$0xff]   ;;  %v2328_v36 = vld [vmem:[%s2967_s2 + $0xc4] ss:$16 sps:$4 sm:$0xff]  }
   0xc   :  { %1690 = vmatmul.mubr.msk.f32.gmra.mrb[4].mxu0 %vm64_vm0, %v32_v15  ;;  %1698 = vmatmul.mubr.msk.f32.gmra.mrb[4].mxu1 %vm64_vm0, %v32_v15  ;;  %v2302_v32 = vld [vmem:[%s2967_s2 + $0xac] ss:$16 sps:$4 sm:$0xff]   ;;  %v2316_v34 = vld [vmem:[%s2967_s2 + $0xa8] ss:$16 sps:$4 sm:$0xff]   ;;  %v36_v35 = vld [vmem:[%s2966_s0 + $0x30] sm:$0xff] }
   0xd   :  { %550 = vmatprep.subr.bf16.mxu0 %v2204_v16  ;;  %591 = vmatprep.subr.bf16.mxu1 %v2211_v17  ;;  %v2333_v37 = vld [vmem:[%s2967_s2 + $0xcc] ss:$16 sps:$4 sm:$0xff]   ;;  %v2340_v38 = vld [vmem:[%s2967_s2 + $0xc0] ss:$16 sps:$4 sm:$0xff]   ;;  %v2347_v39 = vld [vmem:[%s2967_s2 + $0xc8] ss:$16 sps:$4 sm:$0xff]  }
   0xe   :  { %551 = vmatpush1.bf16.msra.mxu0 %v2216_v18  ;;  %171 = vmatprep.mubr.f32.mxu0 %v2974_v3  ;;  %v37_v40 = vld [vmem:[%s2966_s0 + $0x38] sm:$0xff]  ;;  %v2359_v41 = vld [vmem:[%s2967_s2 + $0xe4] ss:$16 sps:$4 sm:$0xff]   ;;  %v2371_v43 = vld [vmem:[%s2967_s2 + $0xe0] ss:$16 sps:$4 sm:$0xff]  }
   0xf   :  { %592 = vmatpush1.bf16.msra.mxu1 %v2223_v19  ;;  %284 = vmatprep.mubr.f32.mxu1 %v2974_v3  ;;  %v2364_v42 = vld [vmem:[%s2967_s2 + $0xec] ss:$16 sps:$4 sm:$0xff]   ;;  %v2378_v44 = vld [vmem:[%s2967_s2 + $0xe8] ss:$16 sps:$4 sm:$0xff]   ;;  %v42_v50 = vld [vmem:[%s2968_s3] sm:$0xf] }
  0x10   :  { %1691 = vmatmul.mubr.msk.f32.gmra.mrb[6].mxu0 %vm64_vm0, %v33_v20  ;;  %1699 = vmatmul.mubr.msk.f32.gmra.mrb[6].mxu1 %vm64_vm0, %v33_v20  ;;  %v47_v57 = vrot.slane %v42_v50, %v46_v48  ;;  %v55_v58 = vrot.slane %v42_v50, %v54_v49  ;;  %v51_v59 = vrot.slane %v42_v50, %v50_v52 }
  0x11   :  { %552 = vmatprep.subr.bf16.mxu0 %v2235_v21  ;;  %593 = vmatprep.subr.bf16.mxu1 %v2240_v22  ;;  %v59_v61 = vrot.slane %v42_v50, %v58_v54 }
  0x12   :  { %553 = vmatpush1.bf16.msra.mxu0 %v2247_v23  ;;  %177 = vmatprep.mubr.f32.mxu0 %v2974_v3 }
  0x13   :  { %594 = vmatpush1.bf16.msra.mxu1 %v2254_v24  ;;  %290 = vmatprep.mubr.f32.mxu1 %v2974_v3 }
  0x14   :  { %1692 = vmatmul.mubr.msk.f32.gmra.mrb[8].mxu0 %vm64_vm0, %v34_v25  ;;  %1700 = vmatmul.mubr.msk.f32.gmra.mrb[8].mxu1 %vm64_vm0, %v34_v25 }
  0x15   :  { %554 = vmatprep.subr.bf16.mxu0 %v2266_v26  ;;  %595 = vmatprep.subr.bf16.mxu1 %v2271_v27 }
  0x16   :  { %555 = vmatpush1.bf16.msra.mxu0 %v2278_v28  ;;  %183 = vmatprep.mubr.f32.mxu0 %v2974_v3 }
  0x17   :  { %596 = vmatpush1.bf16.msra.mxu1 %v2285_v29  ;;  %296 = vmatprep.mubr.f32.mxu1 %v2974_v3 }
  0x18   :  { %1693 = vmatmul.mubr.msk.f32.gmra.mrb[10].mxu0 %vm64_vm0, %v35_v30  ;;  %1701 = vmatmul.mubr.msk.f32.gmra.mrb[10].mxu1 %vm64_vm0, %v35_v30 }
  0x19   :  { %556 = vmatprep.subr.bf16.mxu0 %v2295_v31  ;;  %597 = vmatprep.subr.bf16.mxu1 %v2302_v32 }
  0x1a   :  { %557 = vmatpush1.bf16.msra.mxu0 %v2309_v33  ;;  %189 = vmatprep.mubr.f32.mxu0 %v2974_v3 }
  0x1b   :  { %598 = vmatpush1.bf16.msra.mxu1 %v2316_v34  ;;  %302 = vmatprep.mubr.f32.mxu1 %v2974_v3 }
  0x1c   :  { %1694 = vmatmul.mubr.msk.f32.gmra.mrb[12].mxu0 %vm64_vm0, %v36_v35  ;;  %1702 = vmatmul.mubr.msk.f32.gmra.mrb[12].mxu1 %vm64_vm0, %v36_v35 }
  0x1d   :  { %558 = vmatprep.subr.bf16.mxu0 %v2328_v36  ;;  %599 = vmatprep.subr.bf16.mxu1 %v2333_v37 }
  0x1e   :  { %559 = vmatpush1.bf16.msra.mxu0 %v2340_v38  ;;  %195 = vmatprep.mubr.f32.mxu0 %v2974_v3 }
  0x1f   :  { %600 = vmatpush1.bf16.msra.mxu1 %v2347_v39  ;;  %308 = vmatprep.mubr.f32.mxu1 %v2974_v3 }
  0x20   :  { %1695 = vmatmul.mubr.msk.f32.gmra.mrb[14].mxu0 %vm64_vm0, %v37_v40  ;;  %1703 = vmatmul.mubr.msk.f32.gmra.mrb[14].mxu1 %vm64_vm0, %v37_v40 }
  0x21   :  { %560 = vmatprep.subr.bf16.mxu0 %v2359_v41  ;;  %601 = vmatprep.subr.bf16.mxu1 %v2364_v42 }
  0x22   :  { %561 = vmatpush1.bf16.msra.mxu0 %v2371_v43  ;;  %578 = vmatprep.mubr.bf16.mxu0 %v2976_v45 }
  0x23   :  { %602 = vmatpush1.bf16.msra.mxu1 %v2378_v44  ;;  %619 = vmatprep.mubr.bf16.mxu1 %v2976_v45 }
  0x24   :  { %664 = vmatprep.subr.bf16.mxu0 %v2146_v6  ;;  %705 = vmatprep.subr.bf16.mxu1 %v2153_v7 }
  0x25   :  { %579 = vmatmul.mubr.bf16.vlgmr.msra.gmra.mrb[16].mxu0 %v2976_v45 }
  0x26   :  { %620 = vmatmul.mubr.bf16.vlgmr.msra.gmra.mrb[16].mxu1 %v2976_v45  ;;  %665 = vmatpush1.bf16.msra.mxu0 %v2158_v8 }
  0x27   :  { %706 = vmatpush1.bf16.msra.mxu1 %v2164_v9  ;;  %666 = vmatprep.subr.bf16.mxu0 %v2175_v11 }
  0x28   :  { %707 = vmatprep.subr.bf16.mxu1 %v2182_v12  ;;  %696 = vmatprep.mubr.bf16.mxu0 %v2976_v45 }
  0x29   :  { %737 = vmatprep.mubr.bf16.mxu1 %v2976_v45 }
  0x2a   :  { %667 = vmatpush1.bf16.msra.mxu0 %v2187_v13 }
  0x2b   :  { %708 = vmatpush1.bf16.msra.mxu1 %v2194_v14  ;;  %668 = vmatprep.subr.bf16.mxu0 %v2204_v16 }
  0x2c   :  { %709 = vmatprep.subr.bf16.mxu1 %v2211_v17 }
  0x2e   :  { %669 = vmatpush1.bf16.msra.mxu0 %v2216_v18 }
  0x2f   :  { %710 = vmatpush1.bf16.msra.mxu1 %v2223_v19  ;;  %670 = vmatprep.subr.bf16.mxu0 %v2235_v21 }
  0x30   :  { %711 = vmatprep.subr.bf16.mxu1 %v2240_v22 }
  0x32   :  { %671 = vmatpush1.bf16.msra.mxu0 %v2247_v23 }
  0x33   :  { %712 = vmatpush1.bf16.msra.mxu1 %v2254_v24  ;;  %672 = vmatprep.subr.bf16.mxu0 %v2266_v26 }
  0x34   :  { %713 = vmatprep.subr.bf16.mxu1 %v2271_v27 }
  0x36   :  { %673 = vmatpush1.bf16.msra.mxu0 %v2278_v28 }
  0x37   :  { %714 = vmatpush1.bf16.msra.mxu1 %v2285_v29  ;;  %674 = vmatprep.subr.bf16.mxu0 %v2295_v31 }
  0x38   :  { %715 = vmatprep.subr.bf16.mxu1 %v2302_v32 }
  0x3a   :  { %675 = vmatpush1.bf16.msra.mxu0 %v2309_v33 }
  0x3b   :  { %716 = vmatpush1.bf16.msra.mxu1 %v2316_v34  ;;  %676 = vmatprep.subr.bf16.mxu0 %v2328_v36 }
  0x3c   :  { %717 = vmatprep.subr.bf16.mxu1 %v2333_v37 }
  0x3e   :  { %677 = vmatpush1.bf16.msra.mxu0 %v2340_v38 }
  0x3f   :  { %718 = vmatpush1.bf16.msra.mxu1 %v2347_v39  ;;  %678 = vmatprep.subr.bf16.mxu0 %v2359_v41 }
  0x40   :  { %719 = vmatprep.subr.bf16.mxu1 %v2364_v42 }
  0x42   :  { %679 = vmatpush1.bf16.msra.mxu0 %v2371_v43 }
  0x43   :  { %720 = vmatpush1.bf16.msra.mxu1 %v2378_v44  ;;  %782 = vmatprep.subr.bf16.mxu0 %v2146_v6 }
  0x44   :  { %823 = vmatprep.subr.bf16.mxu1 %v2153_v7 }
  0xd7   :  { %v2429_v51 = vpop.f32.mrb[0].mxu0  ;;  %v2431_v53 = vpop.f32.mrb[0].mxu1 }
  0xd8   :  { %v2433_v55 = vpop.f32.mrb[1].mxu0  ;;  %v2435_v56 = vpop.f32.mrb[1].mxu1 }
  0xdb   :  { %v161_v60 = vpop.f32.mrb[2].mxu0  ;;  %v274_v62 = vpop.f32.mrb[2].mxu1 }
  0xdc   :  { %v2437_v63 = vadd.f32 %v161_v60, %v47_v57  ;;  %v163_v0 = vpop.f32.mrb[3].mxu0  ;;  %v2439_v1 = vadd.f32 %v274_v62, %v55_v58  ;;  %v276_v2 = vpop.f32.mrb[3].mxu1 }
  0xdd   :  { %v2441_v4 = vadd.f32 %v163_v0, %v51_v59  ;;  %v2443_v5 = vadd.f32 %v276_v2, %v59_v61 }
  0xdf   :  { %v167_v10 = vpop.f32.mrb[4].mxu0  ;;  %v280_v15 = vpop.f32.mrb[4].mxu1 }
  0xe0   :  { %v2445_v20 = vadd.f32 %v167_v10, %v47_v57  ;;  %v169_v25 = vpop.f32.mrb[5].mxu0  ;;  %v2447_v30 = vadd.f32 %v280_v15, %v55_v58  ;;  %v282_v35 = vpop.f32.mrb[5].mxu1 }
  0xe1   :  { %v2449_v40 = vadd.f32 %v169_v25, %v51_v59  ;;  %v2451_v46 = vadd.f32 %v282_v35, %v59_v61 }
  0xe3   :  { %2978 = vst [vmem:[#allocation3_spill] sm:$0xff] %v2451_v46  ;;  %v173_v47 = vpop.f32.mrb[6].mxu0  ;;  %v286_v48 = vpop.f32.mrb[6].mxu1 }
  0xe4   :  { %v2453_v49 = vadd.f32 %v173_v47, %v47_v57  ;;  %v175_v50 = vpop.f32.mrb[7].mxu0  ;;  %v2455_v52 = vadd.f32 %v286_v48, %v55_v58  ;;  %v288_v54 = vpop.f32.mrb[7].mxu1 }
  0xe5   :  { %v2457_v60 = vadd.f32 %v175_v50, %v51_v59  ;;  %v2459_v62 = vadd.f32 %v288_v54, %v59_v61 }
  0xe6   :  { %2979 = vst [vmem:[#allocation4_spill] sm:$0xff] %v2453_v49  ;;  %2980 = vst [vmem:[#allocation5_spill] sm:$0xff] %v2455_v52 }
  0xe7   :  { %2981 = vst [vmem:[#allocation6_spill] sm:$0xff] %v2457_v60  ;;  %2982 = vst [vmem:[#allocation7_spill] sm:$0xff] %v2459_v62  ;;  %v179_v0 = vpop.f32.mrb[8].mxu0  ;;  %v292_v2 = vpop.f32.mrb[8].mxu1 }
  0xe8   :  { %v2461_v10 = vadd.f32 %v179_v0, %v47_v57  ;;  %v181_v15 = vpop.f32.mrb[9].mxu0  ;;  %v2463_v25 = vadd.f32 %v292_v2, %v55_v58  ;;  %v294_v35 = vpop.f32.mrb[9].mxu1 }
  0xe9   :  { %v2465_v3 = vadd.f32 %v181_v15, %v51_v59  ;;  %v2467_v47 = vadd.f32 %v294_v35, %v59_v61 }
  0xea   :  { %2983 = vst [vmem:[#allocation8_spill] sm:$0xff] %v2461_v10  ;;  %2984 = vst [vmem:[#allocation9_spill] sm:$0xff] %v2463_v25 }
  0xeb   :  { %2985 = vst [vmem:[#allocation10_spill] sm:$0xff] %v2465_v3  ;;  %2986 = vst [vmem:[#allocation11_spill] sm:$0xff] %v2467_v47  ;;  %v185_v45 = vpop.f32.mrb[10].mxu0  ;;  %v298_v48 = vpop.f32.mrb[10].mxu1 }
  0xec   :  { %v2469_v52 = vadd.f32 %v185_v45, %v47_v57  ;;  %v187_v50 = vpop.f32.mrb[11].mxu0  ;;  %v2471_v60 = vadd.f32 %v298_v48, %v55_v58  ;;  %v300_v54 = vpop.f32.mrb[11].mxu1 }
  0xed   :  { %v2473_v62 = vadd.f32 %v187_v50, %v51_v59  ;;  %v2475_v0 = vadd.f32 %v300_v54, %v59_v61 }
  0xee   :  { %2987 = vst [vmem:[#allocation12_spill] sm:$0xff] %v2469_v52  ;;  %2988 = vst [vmem:[#allocation13_spill] sm:$0xff] %v2471_v60 }
  0xef   :  { %2989 = vst [vmem:[#allocation14_spill] sm:$0xff] %v2473_v62  ;;  %2990 = vst [vmem:[#allocation15_spill] sm:$0xff] %v2475_v0  ;;  %v191_v10 = vpop.f32.mrb[12].mxu0  ;;  %v304_v2 = vpop.f32.mrb[12].mxu1 }
  0xf0   :  { %v2477_v25 = vadd.f32 %v191_v10, %v47_v57  ;;  %v193_v15 = vpop.f32.mrb[13].mxu0  ;;  %v2479_v3 = vadd.f32 %v304_v2, %v55_v58  ;;  %v306_v35 = vpop.f32.mrb[13].mxu1  ;;  %v156_v2 = vadd.f32 %v2429_v51, %v47_v57 }
  0xf1   :  { %v2481_v47 = vadd.f32 %v193_v15, %v51_v59  ;;  %v2483_v45 = vadd.f32 %v306_v35, %v59_v61  ;;  %v269_v15 = vadd.f32 %v2431_v53, %v55_v58 }
  0xf2   :  { %2991 = vst [vmem:[#allocation16_spill] sm:$0xff] %v2477_v25  ;;  %2992 = vst [vmem:[#allocation17_spill] sm:$0xff] %v2479_v3  ;;  %v158_v3 = vadd.f32 %v2433_v55, %v51_v59 }
  0xf3   :  { %2993 = vst [vmem:[#allocation18_spill] sm:$0xff] %v2481_v47  ;;  %2994 = vst [vmem:[#allocation19_spill] sm:$0xff] %v2483_v45  ;;  %v197_v52 = vpop.f32.mrb[14].mxu0  ;;  %v310_v48 = vpop.f32.mrb[14].mxu1  ;;  %v271_v45 = vadd.f32 %v2435_v56, %v59_v61 }
  0xf4   :  { %v2485_v60 = vadd.f32 %v197_v52, %v47_v57  ;;  %v199_v50 = vpop.f32.mrb[15].mxu0  ;;  %v2487_v62 = vadd.f32 %v310_v48, %v55_v58  ;;  %v312_v54 = vpop.f32.mrb[15].mxu1 }
  0xf5   :  { %v2489_v0 = vadd.f32 %v199_v50, %v51_v59  ;;  %v2491_v10 = vadd.f32 %v312_v54, %v59_v61 }
  0xf6   :  { %2995 = vst [vmem:[#allocation20_spill] sm:$0xff] %v2485_v60  ;;  %2996 = vst [vmem:[#allocation21_spill] sm:$0xff] %v2487_v62 }
  0xf7   :  { %2997 = vst [vmem:[#allocation22_spill] sm:$0xff] %v2489_v0  ;;  %2998 = vst [vmem:[#allocation23_spill] sm:$0xff] %v2491_v10 }
  0xf8   :  { %v580_v35 = vpop.f32.mrb[16].mxu0 }
  0xf9   :  { %v628_v47 = vadd.f32 %v580_v35, %v156_v2  ;;  %v621_v52 = vpop.f32.mrb[16].mxu1  ;;  %v582_v60 = vpop.f32.mrb[17].mxu0 }
  0xfa   :  { %v630_v25 = vadd.f32 %v621_v52, %v269_v15  ;;  %v629_v48 = vadd.f32 %v582_v60, %v158_v3  ;;  %v623_v62 = vpop.f32.mrb[17].mxu1  ;;  %v584_v49 = vpop.f32.mrb[18].mxu0 }
  0xfb   :  { %v1736_v50 = vmul.f32 -1.442695, %v628_v47  ;;  %v631_v0 = vadd.f32 %v623_v62, %v271_v45  ;;  %v585_v54 = vpop.f32.mrb[19].mxu0  ;;  %v625_v10 = vpop.f32.mrb[18].mxu1 }
  0xfc   :  { %v1737_v46 = vmul.f32 -1.442695, %v629_v48  ;;  %v626_v51 = vpop.f32.mrb[19].mxu1 }
  0xfd   :  { %1913 = vpow2.f32 %v1736_v50  ;;  %v1738_v55 = vmul.f32 -1.442695, %v631_v0 }
  0xfe   :  { %1915 = vpow2.f32 %v1737_v46 }
  0xff   :  { %1917 = vpow2.f32 %v1738_v55 }
 0x100   :  { %1919 = vtanh.f32 %v630_v25  ;;  %v2999_v25 = vmov 0  }
 0x107   :  { %v1914_v53 = vpop.eup %1913 }
 0x108   :  { %v1916_v57 = vpop.eup %1915  ;;  %v635_v58 = vadd.f32 1.0, %v1914_v53 }
 0x109   :  { %v641_v56 = vadd.f32 1.0, %v1916_v57  ;;  %v1918_v3 = vpop.eup %1917 }
 0x10a   :  { %1921 = vrcp.f32 %v635_v58  ;;  %v1920_v59 = vpop.eup %1919  ;;  %v648_v62 = vadd.f32 1.0, %v1918_v3 }
 0x10b   :  { %1923 = vrcp.f32 %v641_v56 }
 0x10c   :  { %1925 = vrcp.f32 %v648_v62 }
 0x114   :  { %v1922_v61 = vpop.eup %1921 }
 0x115   :  { %v1924_v49 = vpop.eup %1923  ;;  %v652_v60 = vmul.f32 %v1922_v61, %v1920_v59 }
 0x116   :  { %v651_v47 = vmul.f32 0.0, %v1924_v49  ;;  %v1926_v46 = vpop.eup %1925 }
 0x118   :  { %v2497_v45 = vadd.f32 %v652_v60, %v651_v47 }
 0x11a   :  { %1927 = vtanh.f32 %v2497_v45 }
 0x124   :  { %v1928_v0 = vpop.eup %1927 }
 0x125   :  { %v655_v10 = vmul.f32 %v1928_v0, %v1926_v46 }
 0x127   :  { %v663_v2 = vpack.c.bf16 %v655_v10, %v655_v10 }
 0x129   :  { %697 = vmatmul.mubr.bf16.vlgmr.msra.gmra.mrb[20].mxu0 %v663_v2  ;;  %738 = vmatmul.mubr.bf16.vlgmr.msra.gmra.mrb[20].mxu1 %v663_v2 }
 0x12a   :  { %783 = vmatpush1.bf16.msra.mxu0 %v2158_v8  ;;  %824 = vmatpush1.bf16.msra.mxu1 %v2164_v9 }
 0x12b   :  { %784 = vmatprep.subr.bf16.mxu0 %v2175_v11  ;;  %825 = vmatprep.subr.bf16.mxu1 %v2182_v12 }
 0x12c   :  { %814 = vmatprep.mubr.bf16.mxu0 %v2999_v25  ;;  %855 = vmatprep.mubr.bf16.mxu1 %v2999_v25 }
 0x12e   :  { %785 = vmatpush1.bf16.msra.mxu0 %v2187_v13  ;;  %826 = vmatpush1.bf16.msra.mxu1 %v2194_v14 }
 0x12f   :  { %786 = vmatprep.subr.bf16.mxu0 %v2204_v16  ;;  %827 = vmatprep.subr.bf16.mxu1 %v2211_v17 }
 0x132   :  { %787 = vmatpush1.bf16.msra.mxu0 %v2216_v18  ;;  %828 = vmatpush1.bf16.msra.mxu1 %v2223_v19 }
 0x133   :  { %788 = vmatprep.subr.bf16.mxu0 %v2235_v21  ;;  %829 = vmatprep.subr.bf16.mxu1 %v2240_v22 }
 0x136   :  { %789 = vmatpush1.bf16.msra.mxu0 %v2247_v23  ;;  %830 = vmatpush1.bf16.msra.mxu1 %v2254_v24 }
 0x137   :  { %790 = vmatprep.subr.bf16.mxu0 %v2266_v26  ;;  %831 = vmatprep.subr.bf16.mxu1 %v2271_v27 }
 0x13a   :  { %791 = vmatpush1.bf16.msra.mxu0 %v2278_v28  ;;  %832 = vmatpush1.bf16.msra.mxu1 %v2285_v29 }
 0x13b   :  { %792 = vmatprep.subr.bf16.mxu0 %v2295_v31  ;;  %833 = vmatprep.subr.bf16.mxu1 %v2302_v32 }
 0x13e   :  { %793 = vmatpush1.bf16.msra.mxu0 %v2309_v33  ;;  %834 = vmatpush1.bf16.msra.mxu1 %v2316_v34 }
 0x13f   :  { %794 = vmatprep.subr.bf16.mxu0 %v2328_v36  ;;  %835 = vmatprep.subr.bf16.mxu1 %v2333_v37 }
 0x142   :  { %795 = vmatpush1.bf16.msra.mxu0 %v2340_v38  ;;  %836 = vmatpush1.bf16.msra.mxu1 %v2347_v39 }
 0x143   :  { %796 = vmatprep.subr.bf16.mxu0 %v2359_v41  ;;  %837 = vmatprep.subr.bf16.mxu1 %v2364_v42 }
 0x146   :  { %797 = vmatpush1.bf16.msra.mxu0 %v2371_v43  ;;  %838 = vmatpush1.bf16.msra.mxu1 %v2378_v44 }
 0x147   :  { %900 = vmatprep.subr.bf16.mxu0 %v2146_v6  ;;  %941 = vmatprep.subr.bf16.mxu1 %v2153_v7 }
 0x1fc   :  { %v698_v15 = vpop.f32.mrb[20].mxu0  ;;  %v739_v35 = vpop.f32.mrb[20].mxu1 }
 0x1fd   :  { %v746_v52 = vadd.f32 %v698_v15, %v2437_v63  ;;  %v748_v48 = vadd.f32 %v739_v35, %v2439_v1  ;;  %v700_v50 = vpop.f32.mrb[21].mxu0  ;;  %v741_v54 = vpop.f32.mrb[21].mxu1 }
 0x1fe   :  { %v747_v51 = vadd.f32 %v700_v50, %v2441_v4  ;;  %v749_v55 = vadd.f32 %v741_v54, %v2443_v5  ;;  %v702_v53 = vpop.f32.mrb[22].mxu0  ;;  %v743_v57 = vpop.f32.mrb[22].mxu1 }
 0x1ff   :  { %v1739_v58 = vmul.f32 -1.442695, %v746_v52  ;;  %v703_v56 = vpop.f32.mrb[23].mxu0  ;;  %v744_v3 = vpop.f32.mrb[23].mxu1 }
 0x200   :  { %v1740_v59 = vmul.f32 -1.442695, %v747_v51  ;;  %v1741_v61 = vmul.f32 -1.442695, %v749_v55 }
 0x201   :  { %1929 = vpow2.f32 %v1739_v58  ;;  %v3000_v58 = vld [vmem:[#allocation3_spill] sm:$0xff] }
 0x202   :  { %1931 = vpow2.f32 %v1740_v59 }
 0x203   :  { %1933 = vpow2.f32 %v1741_v61 }
 0x204   :  { %1935 = vtanh.f32 %v748_v48 }
 0x20b   :  { %v1930_v49 = vpop.eup %1929 }
 0x20c   :  { %v1932_v60 = vpop.eup %1931  ;;  %v753_v63 = vadd.f32 1.0, %v1930_v49 }
 0x20d   :  { %v759_v1 = vadd.f32 1.0, %v1932_v60  ;;  %v1934_v4 = vpop.eup %1933 }
 0x20e   :  { %1937 = vrcp.f32 %v753_v63  ;;  %v1936_v62 = vpop.eup %1935  ;;  %v766_v0 = vadd.f32 1.0, %v1934_v4 }
 0x20f   :  { %1939 = vrcp.f32 %v759_v1 }
 0x210   :  { %1941 = vrcp.f32 %v766_v0 }
 0x218   :  { %v1938_v5 = vpop.eup %1937 }
 0x219   :  { %v1940_v47 = vpop.eup %1939  ;;  %v770_v46 = vmul.f32 %v1938_v5, %v1936_v62 }
 0x21a   :  { %v769_v10 = vmul.f32 %v1940_v47, %v2497_v45  ;;  %v1942_v15 = vpop.eup %1941 }
 0x21c   :  { %v2539_v2 = vadd.f32 %v770_v46, %v769_v10 }
 0x21e   :  { %1943 = vtanh.f32 %v2539_v2 }
 0x228   :  { %v1944_v35 = vpop.eup %1943 }
 0x229   :  { %v773_v52 = vmul.f32 %v1944_v35, %v1942_v15 }
 0x22b   :  { %v781_v48 = vpack.c.bf16 %v773_v52, %v773_v52 }
 0x22d   :  { %815 = vmatmul.mubr.bf16.vlgmr.msra.gmra.mrb[24].mxu0 %v781_v48  ;;  %856 = vmatmul.mubr.bf16.vlgmr.msra.gmra.mrb[24].mxu1 %v781_v48 }
 0x22e   :  { %901 = vmatpush1.bf16.msra.mxu0 %v2158_v8  ;;  %942 = vmatpush1.bf16.msra.mxu1 %v2164_v9 }
 0x22f   :  { %902 = vmatprep.subr.bf16.mxu0 %v2175_v11  ;;  %943 = vmatprep.subr.bf16.mxu1 %v2182_v12 }
 0x230   :  { %932 = vmatprep.mubr.bf16.mxu0 %v2999_v25  ;;  %973 = vmatprep.mubr.bf16.mxu1 %v2999_v25 }
 0x232   :  { %903 = vmatpush1.bf16.msra.mxu0 %v2187_v13  ;;  %944 = vmatpush1.bf16.msra.mxu1 %v2194_v14 }
 0x233   :  { %904 = vmatprep.subr.bf16.mxu0 %v2204_v16  ;;  %945 = vmatprep.subr.bf16.mxu1 %v2211_v17 }
 0x236   :  { %905 = vmatpush1.bf16.msra.mxu0 %v2216_v18  ;;  %946 = vmatpush1.bf16.msra.mxu1 %v2223_v19 }
 0x237   :  { %906 = vmatprep.subr.bf16.mxu0 %v2235_v21  ;;  %947 = vmatprep.subr.bf16.mxu1 %v2240_v22 }
 0x23a   :  { %907 = vmatpush1.bf16.msra.mxu0 %v2247_v23  ;;  %948 = vmatpush1.bf16.msra.mxu1 %v2254_v24 }
 0x23b   :  { %908 = vmatprep.subr.bf16.mxu0 %v2266_v26  ;;  %949 = vmatprep.subr.bf16.mxu1 %v2271_v27 }
 0x23e   :  { %909 = vmatpush1.bf16.msra.mxu0 %v2278_v28  ;;  %950 = vmatpush1.bf16.msra.mxu1 %v2285_v29 }
 0x23f   :  { %910 = vmatprep.subr.bf16.mxu0 %v2295_v31  ;;  %951 = vmatprep.subr.bf16.mxu1 %v2302_v32 }
 0x242   :  { %911 = vmatpush1.bf16.msra.mxu0 %v2309_v33  ;;  %952 = vmatpush1.bf16.msra.mxu1 %v2316_v34 }
 0x243   :  { %912 = vmatprep.subr.bf16.mxu0 %v2328_v36  ;;  %953 = vmatprep.subr.bf16.mxu1 %v2333_v37 }
 0x246   :  { %913 = vmatpush1.bf16.msra.mxu0 %v2340_v38  ;;  %954 = vmatpush1.bf16.msra.mxu1 %v2347_v39 }
 0x247   :  { %914 = vmatprep.subr.bf16.mxu0 %v2359_v41  ;;  %955 = vmatprep.subr.bf16.mxu1 %v2364_v42 }
 0x24a   :  { %915 = vmatpush1.bf16.msra.mxu0 %v2371_v43  ;;  %956 = vmatpush1.bf16.msra.mxu1 %v2378_v44 }
 0x24b   :  { %1018 = vmatprep.subr.bf16.mxu0 %v2146_v6  ;;  %1059 = vmatprep.subr.bf16.mxu1 %v2153_v7 }
 0x300   :  { %v816_v45 = vpop.f32.mrb[24].mxu0  ;;  %v857_v50 = vpop.f32.mrb[24].mxu1 }
 0x301   :  { %v864_v54 = vadd.f32 %v816_v45, %v2445_v20  ;;  %v866_v51 = vadd.f32 %v857_v50, %v2447_v30  ;;  %v818_v55 = vpop.f32.mrb[25].mxu0  ;;  %v859_v53 = vpop.f32.mrb[25].mxu1 }
 0x302   :  { %v865_v57 = vadd.f32 %v818_v55, %v2449_v40  ;;  %v867_v56 = vadd.f32 %v859_v53, %v3000_v58  ;;  %v820_v3 = vpop.f32.mrb[26].mxu0  ;;  %v861_v59 = vpop.f32.mrb[26].mxu1  ;;  %v3002_v53 = vld [vmem:[#allocation5_spill] sm:$0xff] }
 0x303   :  { %v1742_v61 = vmul.f32 -1.442695, %v864_v54  ;;  %v821_v49 = vpop.f32.mrb[27].mxu0  ;;  %v862_v60 = vpop.f32.mrb[27].mxu1  ;;  %v3003_v3 = vld [vmem:[#allocation6_spill] sm:$0xff] }
 0x304   :  { %v1743_v63 = vmul.f32 -1.442695, %v865_v57  ;;  %v1744_v1 = vmul.f32 -1.442695, %v867_v56 }
 0x305   :  { %1945 = vpow2.f32 %v1742_v61  ;;  %v3004_v61 = vld [vmem:[#allocation7_spill] sm:$0xff] }
 0x306   :  { %1947 = vpow2.f32 %v1743_v63 }
 0x307   :  { %1949 = vpow2.f32 %v1744_v1 }
 0x308   :  { %1951 = vtanh.f32 %v866_v51  ;;  %v3001_v51 = vld [vmem:[#allocation4_spill] sm:$0xff] }
 0x30f   :  { %v1946_v4 = vpop.eup %1945 }
 0x310   :  { %v1948_v62 = vpop.eup %1947  ;;  %v871_v20 = vadd.f32 1.0, %v1946_v4 }
 0x311   :  { %v877_v30 = vadd.f32 1.0, %v1948_v62  ;;  %v1950_v40 = vpop.eup %1949 }
 0x312   :  { %1953 = vrcp.f32 %v871_v20  ;;  %v1952_v5 = vpop.eup %1951  ;;  %v884_v10 = vadd.f32 1.0, %v1950_v40 }
 0x313   :  { %1955 = vrcp.f32 %v877_v30 }
 0x314   :  { %1957 = vrcp.f32 %v884_v10 }
 0x31c   :  { %v1954_v47 = vpop.eup %1953 }
 0x31d   :  { %v1956_v46 = vpop.eup %1955  ;;  %v888_v0 = vmul.f32 %v1954_v47, %v1952_v5 }
 0x31e   :  { %v887_v15 = vmul.f32 %v1956_v46, %v2539_v2  ;;  %v1958_v52 = vpop.eup %1957 }
 0x320   :  { %v2581_v35 = vadd.f32 %v888_v0, %v887_v15 }
 0x322   :  { %1959 = vtanh.f32 %v2581_v35 }
 0x32c   :  { %v1960_v48 = vpop.eup %1959 }
 0x32d   :  { %v891_v45 = vmul.f32 %v1960_v48, %v1958_v52 }
 0x32f   :  { %v899_v50 = vpack.c.bf16 %v891_v45, %v891_v45 }
 0x331   :  { %933 = vmatmul.mubr.bf16.vlgmr.msra.gmra.mrb[28].mxu0 %v899_v50  ;;  %974 = vmatmul.mubr.bf16.vlgmr.msra.gmra.mrb[28].mxu1 %v899_v50 }
 0x332   :  { %1019 = vmatpush1.bf16.msra.mxu0 %v2158_v8  ;;  %1060 = vmatpush1.bf16.msra.mxu1 %v2164_v9 }
 0x333   :  { %1020 = vmatprep.subr.bf16.mxu0 %v2175_v11  ;;  %1061 = vmatprep.subr.bf16.mxu1 %v2182_v12 }
 0x334   :  { %1050 = vmatprep.mubr.bf16.mxu0 %v2999_v25  ;;  %1091 = vmatprep.mubr.bf16.mxu1 %v2999_v25 }
 0x336   :  { %1021 = vmatpush1.bf16.msra.mxu0 %v2187_v13  ;;  %1062 = vmatpush1.bf16.msra.mxu1 %v2194_v14 }
 0x337   :  { %1022 = vmatprep.subr.bf16.mxu0 %v2204_v16  ;;  %1063 = vmatprep.subr.bf16.mxu1 %v2211_v17 }
 0x33a   :  { %1023 = vmatpush1.bf16.msra.mxu0 %v2216_v18  ;;  %1064 = vmatpush1.bf16.msra.mxu1 %v2223_v19 }
 0x33b   :  { %1024 = vmatprep.subr.bf16.mxu0 %v2235_v21  ;;  %1065 = vmatprep.subr.bf16.mxu1 %v2240_v22 }
 0x33e   :  { %1025 = vmatpush1.bf16.msra.mxu0 %v2247_v23  ;;  %1066 = vmatpush1.bf16.msra.mxu1 %v2254_v24 }
 0x33f   :  { %1026 = vmatprep.subr.bf16.mxu0 %v2266_v26  ;;  %1067 = vmatprep.subr.bf16.mxu1 %v2271_v27 }
 0x342   :  { %1027 = vmatpush1.bf16.msra.mxu0 %v2278_v28  ;;  %1068 = vmatpush1.bf16.msra.mxu1 %v2285_v29 }
 0x343   :  { %1028 = vmatprep.subr.bf16.mxu0 %v2295_v31  ;;  %1069 = vmatprep.subr.bf16.mxu1 %v2302_v32 }
 0x346   :  { %1029 = vmatpush1.bf16.msra.mxu0 %v2309_v33  ;;  %1070 = vmatpush1.bf16.msra.mxu1 %v2316_v34 }
 0x347   :  { %1030 = vmatprep.subr.bf16.mxu0 %v2328_v36  ;;  %1071 = vmatprep.subr.bf16.mxu1 %v2333_v37 }
 0x34a   :  { %1031 = vmatpush1.bf16.msra.mxu0 %v2340_v38  ;;  %1072 = vmatpush1.bf16.msra.mxu1 %v2347_v39 }
 0x34b   :  { %1032 = vmatprep.subr.bf16.mxu0 %v2359_v41  ;;  %1073 = vmatprep.subr.bf16.mxu1 %v2364_v42 }
 0x34e   :  { %1033 = vmatpush1.bf16.msra.mxu0 %v2371_v43  ;;  %1074 = vmatpush1.bf16.msra.mxu1 %v2378_v44 }
 0x34f   :  { %1136 = vmatprep.subr.bf16.mxu0 %v2146_v6  ;;  %1177 = vmatprep.subr.bf16.mxu1 %v2153_v7 }
 0x404   :  { %v934_v2 = vpop.f32.mrb[28].mxu0  ;;  %v975_v54 = vpop.f32.mrb[28].mxu1 }
 0x405   :  { %v982_v55 = vadd.f32 %v934_v2, %v3001_v51  ;;  %v984_v57 = vadd.f32 %v975_v54, %v3002_v53  ;;  %v936_v58 = vpop.f32.mrb[29].mxu0  ;;  %v977_v56 = vpop.f32.mrb[29].mxu1 }
 0x406   :  { %v983_v59 = vadd.f32 %v936_v58, %v3003_v3  ;;  %v985_v49 = vadd.f32 %v977_v56, %v3004_v61  ;;  %v938_v60 = vpop.f32.mrb[30].mxu0  ;;  %v979_v63 = vpop.f32.mrb[30].mxu1 }
 0x407   :  { %v1745_v1 = vmul.f32 -1.442695, %v982_v55  ;;  %v939_v4 = vpop.f32.mrb[31].mxu0  ;;  %v980_v62 = vpop.f32.mrb[31].mxu1 }
 0x408   :  { %v1746_v6 = vmul.f32 -1.442695, %v983_v59  ;;  %v1747_v7 = vmul.f32 -1.442695, %v985_v49 }
 0x409   :  { %1961 = vpow2.f32 %v1745_v1 }
 0x40a   :  { %1963 = vpow2.f32 %v1746_v6  ;;  %v2681_v6 = vld [vmem:[%s2967_s2] ss:$16 sps:$4 sm:$0xff]  }
 0x40b   :  { %1965 = vpow2.f32 %v1747_v7  ;;  %v2687_v7 = vld [vmem:[%s2967_s2 + $0x8] ss:$16 sps:$4 sm:$0xff]  }
 0x40c   :  { %1967 = vtanh.f32 %v984_v57 }
 0x413   :  { %v1962_v20 = vpop.eup %1961 }
 0x414   :  { %v1964_v30 = vpop.eup %1963  ;;  %v989_v40 = vadd.f32 1.0, %v1962_v20  ;;  %v2693_v20 = vld [vmem:[%s2967_s2 + $0x24] ss:$16 sps:$4 sm:$0xff]  }
 0x415   :  { %v995_v5 = vadd.f32 1.0, %v1964_v30  ;;  %v1966_v47 = vpop.eup %1965  ;;  %v2699_v30 = vld [vmem:[%s2967_s2 + $0x2c] ss:$16 sps:$4 sm:$0xff]  }
 0x416   :  { %1969 = vrcp.f32 %v989_v40  ;;  %v1968_v46 = vpop.eup %1967  ;;  %v1002_v52 = vadd.f32 1.0, %v1966_v47  ;;  %v2707_v40 = vld [vmem:[%s2967_s2 + $0x20] ss:$16 sps:$4 sm:$0xff]   ;;  %v2719_v47 = vld [vmem:[%s2967_s2 + $0x44] ss:$16 sps:$4 sm:$0xff]  }
 0x417   :  { %1971 = vrcp.f32 %v995_v5  ;;  %v2713_v5 = vld [vmem:[%s2967_s2 + $0x28] ss:$16 sps:$4 sm:$0xff]  }
 0x418   :  { %1973 = vrcp.f32 %v1002_v52  ;;  %v2749_v52 = vld [vmem:[%s2967_s2 + $0x6c] ss:$16 sps:$4 sm:$0xff]  }
 0x420   :  { %v1970_v0 = vpop.eup %1969 }
 0x421   :  { %v1972_v10 = vpop.eup %1971  ;;  %v1006_v15 = vmul.f32 %v1970_v0, %v1968_v46  ;;  %v2725_v46 = vld [vmem:[%s2967_s2 + $0x4c] ss:$16 sps:$4 sm:$0xff]   ;;  %v2731_v0 = vld [vmem:[%s2967_s2 + $0x40] ss:$16 sps:$4 sm:$0xff]  }
 0x422   :  { %v1005_v48 = vmul.f32 %v1972_v10, %v2581_v35  ;;  %v1974_v50 = vpop.eup %1973  ;;  %v2737_v10 = vld [vmem:[%s2967_s2 + $0x48] ss:$16 sps:$4 sm:$0xff]  }
 0x424   :  { %v2623_v45 = vadd.f32 %v1006_v15, %v1005_v48  ;;  %v2743_v15 = vld [vmem:[%s2967_s2 + $0x64] ss:$16 sps:$4 sm:$0xff]   ;;  %v2755_v48 = vld [vmem:[%s2967_s2 + $0x60] ss:$16 sps:$4 sm:$0xff]  }
 0x426   :  { %1975 = vtanh.f32 %v2623_v45 }
 0x430   :  { %v1976_v2 = vpop.eup %1975 }
 0x431   :  { %v1009_v54 = vmul.f32 %v1976_v2, %v1974_v50  ;;  %v2767_v50 = vld [vmem:[%s2967_s2 + $0x84] ss:$16 sps:$4 sm:$0xff]   ;;  %v2773_v2 = vld [vmem:[%s2967_s2 + $0x8c] ss:$16 sps:$4 sm:$0xff]  }
 0x433   :  { %v1017_v51 = vpack.c.bf16 %v1009_v54, %v1009_v54  ;;  %v2779_v54 = vld [vmem:[%s2967_s2 + $0x80] ss:$16 sps:$4 sm:$0xff]  }
 0x435   :  { %1051 = vmatmul.mubr.bf16.vlgmr.msra.gmra.mrb[32].mxu0 %v1017_v51  ;;  %1092 = vmatmul.mubr.bf16.vlgmr.msra.gmra.mrb[32].mxu1 %v1017_v51  ;;  %v2785_v51 = vld [vmem:[%s2967_s2 + $0x88] ss:$16 sps:$4 sm:$0xff]  }
 0x436   :  { %1137 = vmatpush1.bf16.msra.mxu0 %v2158_v8  ;;  %1178 = vmatpush1.bf16.msra.mxu1 %v2164_v9  ;;  %v2661_v8 = vld [vmem:[%s2967_s2 + $0x4] ss:$16 sps:$4 sm:$0xff]   ;;  %v2667_v9 = vld [vmem:[%s2967_s2 + $0xc] ss:$16 sps:$4 sm:$0xff]  }
 0x437   :  { %1138 = vmatprep.subr.bf16.mxu0 %v2175_v11  ;;  %1179 = vmatprep.subr.bf16.mxu1 %v2182_v12 }
 0x438   :  { %1168 = vmatprep.mubr.bf16.mxu0 %v2999_v25  ;;  %1209 = vmatprep.mubr.bf16.mxu1 %v2999_v25 }
 0x43a   :  { %1139 = vmatpush1.bf16.msra.mxu0 %v2187_v13  ;;  %1180 = vmatpush1.bf16.msra.mxu1 %v2194_v14  ;;  %v3005_v13 = vld [vmem:[#allocation8_spill] sm:$0xff] }
 0x43b   :  { %1140 = vmatprep.subr.bf16.mxu0 %v2204_v16  ;;  %1181 = vmatprep.subr.bf16.mxu1 %v2211_v17  ;;  %v3006_v16 = vld [vmem:[#allocation9_spill] sm:$0xff] }
 0x43e   :  { %1141 = vmatpush1.bf16.msra.mxu0 %v2216_v18  ;;  %1182 = vmatpush1.bf16.msra.mxu1 %v2223_v19 }
 0x43f   :  { %1142 = vmatprep.subr.bf16.mxu0 %v2235_v21  ;;  %1183 = vmatprep.subr.bf16.mxu1 %v2240_v22  ;;  %v3007_v21 = vld [vmem:[#allocation10_spill] sm:$0xff] }
 0x442   :  { %1143 = vmatpush1.bf16.msra.mxu0 %v2247_v23  ;;  %1184 = vmatpush1.bf16.msra.mxu1 %v2254_v24  ;;  %v3008_v23 = vld [vmem:[#allocation11_spill] sm:$0xff] }
 0x443   :  { %1144 = vmatprep.subr.bf16.mxu0 %v2266_v26  ;;  %1185 = vmatprep.subr.bf16.mxu1 %v2271_v27 }
 0x446   :  { %1145 = vmatpush1.bf16.msra.mxu0 %v2278_v28  ;;  %1186 = vmatpush1.bf16.msra.mxu1 %v2285_v29 }
 0x447   :  { %1146 = vmatprep.subr.bf16.mxu0 %v2295_v31  ;;  %1187 = vmatprep.subr.bf16.mxu1 %v2302_v32 }
 0x44a   :  { %1147 = vmatpush1.bf16.msra.mxu0 %v2309_v33  ;;  %1188 = vmatpush1.bf16.msra.mxu1 %v2316_v34 }
 0x44b   :  { %1148 = vmatprep.subr.bf16.mxu0 %v2328_v36  ;;  %1189 = vmatprep.subr.bf16.mxu1 %v2333_v37 }
 0x44e   :  { %1149 = vmatpush1.bf16.msra.mxu0 %v2340_v38  ;;  %1190 = vmatpush1.bf16.msra.mxu1 %v2347_v39 }
 0x44f   :  { %1150 = vmatprep.subr.bf16.mxu0 %v2359_v41  ;;  %1191 = vmatprep.subr.bf16.mxu1 %v2364_v42 }
 0x452   :  { %1151 = vmatpush1.bf16.msra.mxu0 %v2371_v43  ;;  %1192 = vmatpush1.bf16.msra.mxu1 %v2378_v44 }
 0x453   :  { %1254 = vmatprep.subr.bf16.mxu0 %v2661_v8  ;;  %1295 = vmatprep.subr.bf16.mxu1 %v2667_v9 }
 0x508   :  { %v1052_v11 = vpop.f32.mrb[32].mxu0  ;;  %v1093_v12 = vpop.f32.mrb[32].mxu1 }
 0x509   :  { %v1100_v14 = vadd.f32 %v1052_v11, %v3005_v13  ;;  %v1102_v17 = vadd.f32 %v1093_v12, %v3006_v16  ;;  %v1054_v18 = vpop.f32.mrb[33].mxu0  ;;  %v1095_v19 = vpop.f32.mrb[33].mxu1  ;;  %v2791_v11 = vld [vmem:[%s2967_s2 + $0xa4] ss:$16 sps:$4 sm:$0xff]   ;;  %v2797_v12 = vld [vmem:[%s2967_s2 + $0xac] ss:$16 sps:$4 sm:$0xff]  }
 0x50a   :  { %v1101_v22 = vadd.f32 %v1054_v18, %v3007_v21  ;;  %v1103_v24 = vadd.f32 %v1095_v19, %v3008_v23  ;;  %v1056_v26 = vpop.f32.mrb[34].mxu0  ;;  %v1097_v27 = vpop.f32.mrb[34].mxu1  ;;  %v2803_v13 = vld [vmem:[%s2967_s2 + $0xa0] ss:$16 sps:$4 sm:$0xff]   ;;  %v3011_v21 = vld [vmem:[#allocation14_spill] sm:$0xff] }
 0x50b   :  { %v1748_v28 = vmul.f32 -1.442695, %v1100_v14  ;;  %v1057_v29 = vpop.f32.mrb[35].mxu0  ;;  %v1098_v31 = vpop.f32.mrb[35].mxu1  ;;  %v2809_v14 = vld [vmem:[%s2967_s2 + $0xa8] ss:$16 sps:$4 sm:$0xff]  }
 0x50c   :  { %v1749_v32 = vmul.f32 -1.442695, %v1101_v22  ;;  %v1750_v33 = vmul.f32 -1.442695, %v1103_v24  ;;  %v3010_v18 = vld [vmem:[#allocation13_spill] sm:$0xff]  ;;  %v3012_v22 = vld [vmem:[#allocation15_spill] sm:$0xff] }
 0x50d   :  { %1977 = vpow2.f32 %v1748_v28 }
 0x50e   :  { %1979 = vpow2.f32 %v1749_v32 }
 0x50f   :  { %1981 = vpow2.f32 %v1750_v33 }
 0x510   :  { %1983 = vtanh.f32 %v1102_v17  ;;  %v3009_v17 = vld [vmem:[#allocation12_spill] sm:$0xff] }
 0x517   :  { %v1978_v34 = vpop.eup %1977 }
 0x518   :  { %v1980_v35 = vpop.eup %1979  ;;  %v1107_v55 = vadd.f32 1.0, %v1978_v34 }
 0x519   :  { %v1113_v53 = vadd.f32 1.0, %v1980_v35  ;;  %v1982_v57 = vpop.eup %1981 }
 0x51a   :  { %1985 = vrcp.f32 %v1107_v55  ;;  %v1984_v58 = vpop.eup %1983  ;;  %v1120_v61 = vadd.f32 1.0, %v1982_v57 }
 0x51b   :  { %1987 = vrcp.f32 %v1113_v53 }
 0x51c   :  { %1989 = vrcp.f32 %v1120_v61 }
 0x524   :  { %v1986_v56 = vpop.eup %1985 }
 0x525   :  { %v1988_v3 = vpop.eup %1987  ;;  %v1124_v59 = vmul.f32 %v1986_v56, %v1984_v58 }
 0x526   :  { %v1123_v49 = vmul.f32 %v1988_v3, %v2623_v45  ;;  %v1990_v63 = vpop.eup %1989  ;;  %v2761_v45 = vld [vmem:[%s2967_s2 + $0x68] ss:$16 sps:$4 sm:$0xff]  }
 0x528   :  { %v2675_v60 = vadd.f32 %v1124_v59, %v1123_v49  ;;  %v2070_v49 = vld [vmem:[%s2967_s2 + $0xcc] ss:$16 sps:$4 sm:$0xff]  }
 0x52a   :  { %1991 = vtanh.f32 %v2675_v60 }
 0x534   :  { %v1992_v1 = vpop.eup %1991 }
 0x535   :  { %v1127_v4 = vmul.f32 %v1992_v1, %v1990_v63  ;;  %v2072_v63 = vld [vmem:[%s2967_s2 + $0xc8] ss:$16 sps:$4 sm:$0xff]   ;;  %v2073_v1 = vld [vmem:[%s2967_s2 + $0xe4] ss:$16 sps:$4 sm:$0xff]  }
 0x537   :  { %v1135_v62 = vpack.c.bf16 %v1127_v4, %v1127_v4  ;;  %v2074_v4 = vld [vmem:[%s2967_s2 + $0xec] ss:$16 sps:$4 sm:$0xff]  }
 0x539   :  { %1169 = vmatmul.mubr.bf16.vlgmr.msra.gmra.mrb[36].mxu0 %v1135_v62  ;;  %1210 = vmatmul.mubr.bf16.vlgmr.msra.gmra.mrb[36].mxu1 %v1135_v62  ;;  %v2075_v62 = vld [vmem:[%s2967_s2 + $0xe0] ss:$16 sps:$4 sm:$0xff]  }
 0x53a   :  { %1255 = vmatpush1.bf16.msra.mxu0 %v2681_v6  ;;  %1296 = vmatpush1.bf16.msra.mxu1 %v2687_v7 }
 0x53b   :  { %1256 = vmatprep.subr.bf16.mxu0 %v2693_v20  ;;  %1297 = vmatprep.subr.bf16.mxu1 %v2699_v30 }
 0x53c   :  { %1286 = vmatprep.mubr.bf16.mxu0 %v2999_v25  ;;  %1327 = vmatprep.mubr.bf16.mxu1 %v2999_v25 }
 0x53e   :  { %1257 = vmatpush1.bf16.msra.mxu0 %v2707_v40  ;;  %1298 = vmatpush1.bf16.msra.mxu1 %v2713_v5 }
 0x53f   :  { %1258 = vmatprep.subr.bf16.mxu0 %v2719_v47  ;;  %1299 = vmatprep.subr.bf16.mxu1 %v2725_v46 }
 0x542   :  { %1259 = vmatpush1.bf16.msra.mxu0 %v2731_v0  ;;  %1300 = vmatpush1.bf16.msra.mxu1 %v2737_v10 }
 0x543   :  { %1260 = vmatprep.subr.bf16.mxu0 %v2743_v15  ;;  %1301 = vmatprep.subr.bf16.mxu1 %v2749_v52 }
 0x546   :  { %1261 = vmatpush1.bf16.msra.mxu0 %v2755_v48  ;;  %1302 = vmatpush1.bf16.msra.mxu1 %v2761_v45 }
 0x547   :  { %1262 = vmatprep.subr.bf16.mxu0 %v2767_v50  ;;  %1303 = vmatprep.subr.bf16.mxu1 %v2773_v2 }
 0x54a   :  { %1263 = vmatpush1.bf16.msra.mxu0 %v2779_v54  ;;  %1304 = vmatpush1.bf16.msra.mxu1 %v2785_v51 }
 0x54b   :  { %1264 = vmatprep.subr.bf16.mxu0 %v2791_v11  ;;  %1305 = vmatprep.subr.bf16.mxu1 %v2797_v12 }
 0x54e   :  { %1265 = vmatpush1.bf16.msra.mxu0 %v2803_v13  ;;  %1306 = vmatpush1.bf16.msra.mxu1 %v2809_v14 }
 0x54f   :  { %1266 = vmatprep.subr.bf16.mxu0 %v2328_v36  ;;  %1307 = vmatprep.subr.bf16.mxu1 %v2333_v37 }
 0x552   :  { %1267 = vmatpush1.bf16.msra.mxu0 %v2340_v38  ;;  %1308 = vmatpush1.bf16.msra.mxu1 %v2347_v39 }
 0x553   :  { %1268 = vmatprep.subr.bf16.mxu0 %v2359_v41  ;;  %1309 = vmatprep.subr.bf16.mxu1 %v2364_v42 }
 0x556   :  { %1269 = vmatpush1.bf16.msra.mxu0 %v2371_v43  ;;  %1310 = vmatpush1.bf16.msra.mxu1 %v2378_v44 }
 0x557   :  { %1372 = vmatprep.subr.bf16.mxu0 %v2661_v8  ;;  %1413 = vmatprep.subr.bf16.mxu1 %v2667_v9 }
 0x60c   :  { %v1170_v16 = vpop.f32.mrb[36].mxu0  ;;  %v1211_v36 = vpop.f32.mrb[36].mxu1 }
 0x60d   :  { %v1218_v37 = vadd.f32 %v1170_v16, %v3009_v17  ;;  %v1220_v38 = vadd.f32 %v1211_v36, %v3010_v18  ;;  %v1172_v19 = vpop.f32.mrb[37].mxu0  ;;  %v1213_v39 = vpop.f32.mrb[37].mxu1 }
 0x60e   :  { %v1219_v41 = vadd.f32 %v1172_v19, %v3011_v21  ;;  %v1221_v42 = vadd.f32 %v1213_v39, %v3012_v22  ;;  %v1174_v23 = vpop.f32.mrb[38].mxu0  ;;  %v1215_v43 = vpop.f32.mrb[38].mxu1 }
 0x60f   :  { %v1751_v24 = vmul.f32 -1.442695, %v1218_v37  ;;  %v1175_v44 = vpop.f32.mrb[39].mxu0  ;;  %v1216_v26 = vpop.f32.mrb[39].mxu1 }
 0x610   :  { %v1752_v8 = vmul.f32 -1.442695, %v1219_v41  ;;  %v1753_v9 = vmul.f32 -1.442695, %v1221_v42  ;;  %v1483_v44 = vld [vmem:[%s2969_s4 + $0x8] sm:$0xff] }
 0x611   :  { %1993 = vpow2.f32 %v1751_v24  ;;  %v1482_v24 = vld [vmem:[%s2969_s4] sm:$0xff] }
 0x612   :  { %1995 = vpow2.f32 %v1752_v8  ;;  %v1832_v26 = vpack.c.bf16 %v1483_v44, %v1482_v24  ;;  %v2079_v8 = vmov 0.0|0.0   ;;  %v1578_v24 = vld [vmem:[%s2970_s6 + $0x10] sm:$0xff]  ;;  %v1579_v44 = vld [vmem:[%s2970_s6 + $0x18] sm:$0xff] }
 0x613   :  { %1997 = vpow2.f32 %v1753_v9  ;;  %v1484_v9 = vld [vmem:[%s2969_s4 + $0x10] sm:$0xff] }
 0x614   :  { %1999 = vtanh.f32 %v1220_v38 }
 0x61b   :  { %v1994_v27 = vpop.eup %1993 }
 0x61c   :  { %v1996_v28 = vpop.eup %1995  ;;  %v1225_v29 = vadd.f32 1.0, %v1994_v27  ;;  %v1485_v27 = vld [vmem:[%s2969_s4 + $0x18] sm:$0xff] }
 0x61d   :  { %v1231_v31 = vadd.f32 1.0, %v1996_v28  ;;  %v1998_v32 = vpop.eup %1997  ;;  %v1835_v28 = vpack.c.bf16 %v1485_v27, %v1484_v9 }
 0x61e   :  { %2001 = vrcp.f32 %v1225_v29  ;;  %v2000_v33 = vpop.eup %1999  ;;  %v1238_v53 = vadd.f32 1.0, %v1998_v32  ;;  %v1486_v29 = vld [vmem:[%s2969_s4 + $0x20] sm:$0xff] }
 0x61f   :  { %2003 = vrcp.f32 %v1231_v31  ;;  %v1487_v31 = vld [vmem:[%s2969_s4 + $0x28] sm:$0xff] }
 0x620   :  { %2005 = vrcp.f32 %v1238_v53  ;;  %v1838_v32 = vpack.c.bf16 %v1487_v31, %v1486_v29  ;;  %v1491_v53 = vld [vmem:[%s2969_s4 + $0x48] sm:$0xff]  ;;  %v1761_v29 = vld [vmem:[%s2972_s7] ss:$0 sm:$0xff] }
 0x628   :  { %v2002_v34 = vpop.eup %2001 }
 0x629   :  { %v2004_v35 = vpop.eup %2003  ;;  %v1242_v55 = vmul.f32 %v2002_v34, %v2000_v33  ;;  %v1488_v33 = vld [vmem:[%s2969_s4 + $0x30] sm:$0xff]  ;;  %v1489_v34 = vld [vmem:[%s2969_s4 + $0x38] sm:$0xff] }
 0x62a   :  { %v1241_v57 = vmul.f32 %v2004_v35, %v2675_v60  ;;  %v2006_v56 = vpop.eup %2005  ;;  %v2071_v60 = vld [vmem:[%s2967_s2 + $0xc0] ss:$16 sps:$4 sm:$0xff]   ;;  %v1841_v35 = vpack.c.bf16 %v1489_v34, %v1488_v33 }
 0x62c   :  { %v2827_v58 = vadd.f32 %v1242_v55, %v1241_v57  ;;  %v1490_v55 = vld [vmem:[%s2969_s4 + $0x40] sm:$0xff] }
 0x62d   :  { %v1844_v57 = vpack.c.bf16 %v1491_v53, %v1490_v55 }
 0x62e   :  { %2007 = vtanh.f32 %v2827_v58 }
 0x638   :  { %v2008_v3 = vpop.eup %2007 }
 0x639   :  { %v1245_v59 = vmul.f32 %v2008_v3, %v2006_v56  ;;  %v1493_v56 = vld [vmem:[%s2969_s4 + $0x58] sm:$0xff]  ;;  %v1494_v3 = vld [vmem:[%s2969_s4 + $0x60] sm:$0xff] }
 0x63b   :  { %v1253_v61 = vpack.c.bf16 %v1245_v59, %v1245_v59 }
 0x63d   :  { %1287 = vmatmul.mubr.bf16.vlgmr.msra.gmra.mrb[40].mxu0 %v1253_v61  ;;  %1328 = vmatmul.mubr.bf16.vlgmr.msra.gmra.mrb[40].mxu1 %v1253_v61  ;;  %v1495_v61 = vld [vmem:[%s2969_s4 + $0x68] sm:$0xff] }
 0x63e   :  { %1373 = vmatpush1.bf16.msra.mxu0 %v2681_v6  ;;  %1414 = vmatpush1.bf16.msra.mxu1 %v2687_v7  ;;  %v2076_v6 = vld [vmem:[%s2967_s2 + $0xe8] ss:$16 sps:$4 sm:$0xff]  }
 0x63f   :  { %1374 = vmatprep.subr.bf16.mxu0 %v2693_v20  ;;  %1415 = vmatprep.subr.bf16.mxu1 %v2699_v30  ;;  %v3013_v30 = vld [vmem:[#allocation16_spill] sm:$0xff] }
 0x640   :  { %1404 = vmatprep.mubr.bf16.mxu0 %v2999_v25  ;;  %1445 = vmatprep.mubr.bf16.mxu1 %v2999_v25  ;;  %v2069_v25 = vld [vmem:[%s2967_s2 + $0xc4] ss:$16 sps:$4 sm:$0xff]  }
 0x642   :  { %1375 = vmatpush1.bf16.msra.mxu0 %v2707_v40  ;;  %1416 = vmatpush1.bf16.msra.mxu1 %v2713_v5  ;;  %v3014_v5 = vld [vmem:[#allocation17_spill] sm:$0xff] }
 0x643   :  { %1376 = vmatprep.subr.bf16.mxu0 %v2719_v47  ;;  %1417 = vmatprep.subr.bf16.mxu1 %v2725_v46 }
 0x646   :  { %1377 = vmatpush1.bf16.msra.mxu0 %v2731_v0  ;;  %1418 = vmatpush1.bf16.msra.mxu1 %v2737_v10  ;;  %v3015_v10 = vld [vmem:[#allocation18_spill] sm:$0xff] }
 0x647   :  { %1378 = vmatprep.subr.bf16.mxu0 %v2743_v15  ;;  %1419 = vmatprep.subr.bf16.mxu1 %v2749_v52  ;;  %v3016_v52 = vld [vmem:[#allocation19_spill] sm:$0xff] }
 0x64a   :  { %1379 = vmatpush1.bf16.msra.mxu0 %v2755_v48  ;;  %1420 = vmatpush1.bf16.msra.mxu1 %v2761_v45 }
 0x64b   :  { %1380 = vmatprep.subr.bf16.mxu0 %v2767_v50  ;;  %1421 = vmatprep.subr.bf16.mxu1 %v2773_v2 }
 0x64e   :  { %1381 = vmatpush1.bf16.msra.mxu0 %v2779_v54  ;;  %1422 = vmatpush1.bf16.msra.mxu1 %v2785_v51 }
 0x64f   :  { %1382 = vmatprep.subr.bf16.mxu0 %v2791_v11  ;;  %1423 = vmatprep.subr.bf16.mxu1 %v2797_v12 }
 0x652   :  { %1383 = vmatpush1.bf16.msra.mxu0 %v2803_v13  ;;  %1424 = vmatpush1.bf16.msra.mxu1 %v2809_v14 }
 0x653   :  { %1384 = vmatprep.subr.bf16.mxu0 %v2069_v25  ;;  %1425 = vmatprep.subr.bf16.mxu1 %v2070_v49  ;;  %v3017_v25 = vmov 0.0   ;;  %v1850_v49 = vpack.c.bf16 %v1495_v61, %v1494_v3 }
 0x656   :  { %1385 = vmatpush1.bf16.msra.mxu0 %v2071_v60  ;;  %1426 = vmatpush1.bf16.msra.mxu1 %v2072_v63  ;;  %v1496_v60 = vld [vmem:[%s2969_s4 + $0x70] sm:$0xff]  ;;  %v1497_v63 = vld [vmem:[%s2969_s4 + $0x78] sm:$0xff] }
 0x657   :  { %1386 = vmatprep.subr.bf16.mxu0 %v2073_v1  ;;  %1427 = vmatprep.subr.bf16.mxu1 %v2074_v4  ;;  %v1853_v1 = vpack.c.bf16 %v1497_v63, %v1496_v60  ;;  %v1576_v4 = vld [vmem:[%s2970_s6] sm:$0xff] }
 0x65a   :  { %1387 = vmatpush1.bf16.msra.mxu0 %v2075_v62  ;;  %1428 = vmatpush1.bf16.msra.mxu1 %v2076_v6  ;;  %v1577_v62 = vld [vmem:[%s2970_s6 + $0x8] sm:$0xff] }
 0x65b   :  { %1831 = vmatprep.subr.bf16.mxu0 %v2079_v8  ;;  %1855 = vmatprep.subr.bf16.mxu1 %v2079_v8  ;;  %v1856_v6 = vpack.c.bf16 %v1577_v62, %v1576_v4 }
 0x710   :  { %v1288_v7 = vpop.f32.mrb[40].mxu0  ;;  %v1329_v20 = vpop.f32.mrb[40].mxu1 }
 0x711   :  { %v1336_v40 = vadd.f32 %v1288_v7, %v3013_v30  ;;  %v1338_v47 = vadd.f32 %v1329_v20, %v3014_v5  ;;  %v1290_v46 = vpop.f32.mrb[41].mxu0  ;;  %v1331_v0 = vpop.f32.mrb[41].mxu1  ;;  %v3018_v30 = vld [vmem:[#allocation20_spill] sm:$0xff]  ;;  %v3019_v5 = vld [vmem:[#allocation21_spill] sm:$0xff] }
 0x712   :  { %v1337_v15 = vadd.f32 %v1290_v46, %v3015_v10  ;;  %v1339_v48 = vadd.f32 %v1331_v0, %v3016_v52  ;;  %v1292_v45 = vpop.f32.mrb[42].mxu0  ;;  %v1333_v50 = vpop.f32.mrb[42].mxu1  ;;  %v3020_v10 = vld [vmem:[#allocation22_spill] sm:$0xff]  ;;  %v3021_v52 = vld [vmem:[#allocation23_spill] sm:$0xff] }
 0x713   :  { %v1754_v2 = vmul.f32 -1.442695, %v1336_v40  ;;  %v1293_v54 = vpop.f32.mrb[43].mxu0  ;;  %v1334_v51 = vpop.f32.mrb[43].mxu1 }
 0x714   :  { %v1755_v11 = vmul.f32 -1.442695, %v1337_v15  ;;  %v1756_v12 = vmul.f32 -1.442695, %v1339_v48 }
 0x715   :  { %2009 = vpow2.f32 %v1754_v2 }
 0x716   :  { %2011 = vpow2.f32 %v1755_v11 }
 0x717   :  { %2013 = vpow2.f32 %v1756_v12 }
 0x718   :  { %2015 = vtanh.f32 %v1338_v47 }
 0x71f   :  { %v2010_v13 = vpop.eup %2009 }
 0x720   :  { %v2012_v14 = vpop.eup %2011  ;;  %v1343_v16 = vadd.f32 1.0, %v2010_v13 }
 0x721   :  { %v1349_v36 = vadd.f32 1.0, %v2012_v14  ;;  %v2014_v17 = vpop.eup %2013 }
 0x722   :  { %2017 = vrcp.f32 %v1343_v16  ;;  %v2016_v37 = vpop.eup %2015  ;;  %v1356_v39 = vadd.f32 1.0, %v2014_v17 }
 0x723   :  { %2019 = vrcp.f32 %v1349_v36 }
 0x724   :  { %2021 = vrcp.f32 %v1356_v39 }
 0x72c   :  { %v2018_v18 = vpop.eup %2017 }
 0x72d   :  { %v2020_v38 = vpop.eup %2019  ;;  %v1360_v19 = vmul.f32 %v2018_v18, %v2016_v37 }
 0x72e   :  { %v1359_v21 = vmul.f32 %v2020_v38, %v2827_v58  ;;  %v2022_v22 = vpop.eup %2021  ;;  %v1492_v58 = vld [vmem:[%s2969_s4 + $0x50] sm:$0xff] }
 0x72f   :  { %v1847_v59 = vpack.c.bf16 %v1493_v56, %v1492_v58 }
 0x730   :  { %v2883_v41 = vadd.f32 %v1360_v19, %v1359_v21 }
 0x732   :  { %2023 = vtanh.f32 %v2883_v41 }
 0x73c   :  { %v2024_v42 = vpop.eup %2023 }
 0x73d   :  { %v1363_v23 = vmul.f32 %v2024_v42, %v2022_v22 }
 0x73f   :  { %v1371_v43 = vpack.c.bf16 %v1363_v23, %v1363_v23 }
 0x741   :  { %1405 = vmatmul.mubr.bf16.vlgmr.msra.gmra.mrb[44].mxu0 %v1371_v43  ;;  %1446 = vmatmul.mubr.bf16.vlgmr.msra.gmra.mrb[44].mxu1 %v1371_v43 }
 0x742   :  { %1833 = vmatpush3.bf16.msra.mxu0 %v1832_v26  ;;  %1817 = vmatprep.mubr.msk.f32.mxu0 %vm2080_vm1, %v3017_v25  ;;  %v1859_v26 = vpack.c.bf16 %v1579_v44, %v1578_v24 }
 0x743   :  { %1834 = vmatprep.subr.bf16.mxu0 %v2079_v8  ;;  %1828 = vmatprep.mubr.msk.f32.mxu1 %vm2080_vm1, %v3017_v25 }
 0x744   :  { %1857 = vmatpush3.bf16.msra.mxu1 %v1856_v6 }
 0x745   :  { %1858 = vmatprep.subr.bf16.mxu1 %v2079_v8 }
 0x746   :  { %1836 = vmatpush3.bf16.msra.mxu0 %v1835_v28 }
 0x747   :  { %1837 = vmatprep.subr.bf16.mxu0 %v2079_v8 }
 0x748   :  { %1860 = vmatpush3.bf16.msra.mxu1 %v1859_v26 }
 0x74a   :  { %1839 = vmatpush3.bf16.msra.mxu0 %v1838_v32 }
 0x74b   :  { %1840 = vmatprep.subr.bf16.mxu0 %v2079_v8 }
 0x74e   :  { %1842 = vmatpush3.bf16.msra.mxu0 %v1841_v35 }
 0x74f   :  { %1843 = vmatprep.subr.bf16.mxu0 %v2079_v8 }
 0x752   :  { %1845 = vmatpush3.bf16.msra.mxu0 %v1844_v57 }
 0x753   :  { %1846 = vmatprep.subr.bf16.mxu0 %v2079_v8 }
 0x756   :  { %1848 = vmatpush3.bf16.msra.mxu0 %v1847_v59 }
 0x757   :  { %1849 = vmatprep.subr.bf16.mxu0 %v2079_v8 }
 0x75a   :  { %1851 = vmatpush3.bf16.msra.mxu0 %v1850_v49 }
 0x75b   :  { %1852 = vmatprep.subr.bf16.mxu0 %v2079_v8 }
 0x75e   :  { %1854 = vmatpush3.bf16.msra.mxu0 %v1853_v1 }
 0x814   :  { %v1406_v7 = vpop.f32.mrb[44].mxu0  ;;  %v1447_v20 = vpop.f32.mrb[44].mxu1 }
 0x815   :  { %v1454_v40 = vadd.f32 %v1406_v7, %v3018_v30  ;;  %v1456_v47 = vadd.f32 %v1447_v20, %v3019_v5  ;;  %v1408_v46 = vpop.f32.mrb[45].mxu0  ;;  %v1449_v0 = vpop.f32.mrb[45].mxu1 }
 0x816   :  { %v1455_v15 = vadd.f32 %v1408_v46, %v3020_v10  ;;  %v1457_v48 = vadd.f32 %v1449_v0, %v3021_v52  ;;  %v1410_v45 = vpop.f32.mrb[46].mxu0  ;;  %v1451_v50 = vpop.f32.mrb[46].mxu1 }
 0x817   :  { %v1757_v2 = vmul.f32 -1.442695, %v1454_v40  ;;  %v1411_v54 = vpop.f32.mrb[47].mxu0  ;;  %v1452_v51 = vpop.f32.mrb[47].mxu1 }
 0x818   :  { %v1758_v11 = vmul.f32 -1.442695, %v1455_v15  ;;  %v1759_v12 = vmul.f32 -1.442695, %v1457_v48 }
 0x819   :  { %2025 = vpow2.f32 %v1757_v2 }
 0x81a   :  { %2027 = vpow2.f32 %v1758_v11 }
 0x81b   :  { %2029 = vpow2.f32 %v1759_v12 }
 0x81c   :  { %2031 = vtanh.f32 %v1456_v47 }
 0x823   :  { %v2026_v13 = vpop.eup %2025 }
 0x824   :  { %v2028_v14 = vpop.eup %2027  ;;  %v1461_v16 = vadd.f32 1.0, %v2026_v13 }
 0x825   :  { %v1467_v36 = vadd.f32 1.0, %v2028_v14  ;;  %v2030_v17 = vpop.eup %2029 }
 0x826   :  { %2033 = vrcp.f32 %v1461_v16  ;;  %v2032_v37 = vpop.eup %2031  ;;  %v1474_v39 = vadd.f32 1.0, %v2030_v17 }
 0x827   :  { %2035 = vrcp.f32 %v1467_v36 }
 0x828   :  { %2037 = vrcp.f32 %v1474_v39 }
 0x830   :  { %v2034_v18 = vpop.eup %2033 }
 0x831   :  { %v2036_v38 = vpop.eup %2035  ;;  %v1478_v19 = vmul.f32 %v2034_v18, %v2032_v37 }
 0x832   :  { %v1477_v21 = vmul.f32 %v2036_v38, %v2883_v41  ;;  %v2038_v42 = vpop.eup %2037  ;;  %v1760_v41 = vld [vmem:[%s2971_s5] ss:$0 sm:$0xff] }
 0x834   :  { %v1479_v22 = vadd.f32 %v1478_v19, %v1477_v21 }
 0x836   :  { %2039 = vtanh.f32 %v1479_v22 }
 0x840   :  { %v2040_v23 = vpop.eup %2039 }
 0x841   :  { %v1481_v43 = vmul.f32 %v2040_v23, %v2038_v42 }
 0x843   :  { %1818 = vmatmul.mubr.f32.vlgmr.msra.gmra.mrb[48].mxu0 %v1481_v43 }
 0x916   :  { %v1571_v8 = vpop.f32.mrb[48].mxu0 }
 0x917   :  { %v1572_v9 = vadd.f32 %v1760_v41, %v1571_v8  ;;  %v1819_v27 = vpop.f32.mrb[49].mxu0 }
 0x919   :  { %v1575_v28 = vmax.f32 %v1572_v9, 0.0 }
 0x91b   :  { %1829 = vmatmul.mubr.msk.f32.vlgmr.msra.gmra.mrb[48].mxu1 %vm1587_vm2, %v1575_v28 }
 0x9ee   :  { %v1657_v31 = vpop.f32.mrb[48].mxu1 }
 0x9ef   :  { %v1658_v32 = vadd.f32 %v1761_v29, %v1657_v31  ;;  %v1830_v33 = vpop.f32.mrb[49].mxu1 }
 0x9f1   :  { %v1662_v34 = vsel %vm1661_vm3, %v1658_v32, -inf }
 0x9f2   :  { %1663 = vmax.xlane.f32.xlu0 %v1662_v34 }
 0xa7f   :  { %v1664_v35 = vpop.xlane.xlu0 %1663 }
 0xa80   :  { %v1665_v55 = vsub.f32 %v1658_v32, %v1664_v35 }
 0xa82   :  { %v1666_v53 = vmul.f32 1.442695, %v1665_v55 }
 0xa84   :  { %2041 = vpow2.f32 %v1666_v53 }
 0xa8e   :  { %v2042_v57 = vpop.eup %2041 }
 0xa8f   :  { %v1668_v58 = vsel %vm1661_vm3, %v2042_v57, 0.0 }
 0xa90   :  { %1669 = vadd.xlane.f32.xlu0 %v1668_v58 }
 0xb1d   :  { %v1670_v56 = vpop.xlane.xlu0 %1669 }
 0xb1e   :  { %2043 = vrcp.f32 %v1670_v56 }
 0xb28   :  { %v2044_v3 = vpop.eup %2043 }
 0xb29   :  { %v1672_v59 = vmul.f32 %v2044_v3, %v1670_v56 }
 0xb2b   :  { %v1673_v61 = vsub.f32 2.0, %v1672_v59 }
 0xb2d   :  { %v1674_v25 = vmul.f32 %v2044_v3, %v1673_v61 }
 0xb2f   :  { %v1675_v49 = vmul.f32 %v2042_v57, %v1674_v25 }
 0xb31   :  { %1676 = vst.msk [vmem:[%s2973_s8] sm:$0xff] %vm1661_vm3, %v1675_v49 }

</bundles_post_ra>
